<compile_context>
chip_gen: v6e
topology: v6e:2x2x1
jax: 0.10.0
libtpu: 0.0.40
codegen_flags: <defaults>
</compile_context>

<pallas_src>
import functools

import jax
import jax.numpy as jnp
from jax.experimental import pallas as pl
from jax.experimental.pallas import tpu as pltpu


# ----------------------------------------------------------------------------
# Fused kernel: gated conv1 + relu -> gated conv2 + relu -> residual + relu + LN
# One grid step per batch element; intermediates never leave VMEM.
# ----------------------------------------------------------------------------
def _gated_conv(xp_ref, w_ref, b_ref, tt, ts, cout, ksize, dilation):
    """relu(out * sigmoid(mask)) of a causally-masked 'same' conv, as one matmul.

    xp_ref : (tt + pad, ts + 2*pad, cin) zero-padded input (VMEM scratch)
    w_ref  : (n_taps * cin, 2*cout) im2col weight matrix (causal taps only)
    b_ref  : (1, 2*cout)
    returns: (tt*ts, cout) float32
    """
    n_kh = ksize // 2 + 1                      # causal: rows below center are zero
    cols = []
    for kh in range(n_kh):                     # small static tap loop (<= k*(k//2+1))
        for kw in range(ksize):
            win = xp_ref[kh * dilation: kh * dilation + tt,
                         kw * dilation: kw * dilation + ts, :]       # (tt, ts, cin)
            cols.append(win.reshape(tt * ts, -1))
    patch = jnp.concatenate(cols, axis=-1)                           # (tt*ts, taps*cin)
    acc = jnp.dot(patch, w_ref[...],
                  preferred_element_type=jnp.float32) + b_ref[...]   # (tt*ts, 2*cout)
    gate = acc[:, :cout]                       # torch: mask, out = x.chunk(2, dim=1)
    out = acc[:, cout:]
    return jnp.maximum(jax.nn.sigmoid(gate) * out, 0.0)


def _gated_block_kernel(x_ref, w1_ref, b1_ref, w2_ref, b2_ref, g_ref, bt_ref,
                        o_ref, xp_ref, *, ksize, dilation, eps):
    # x_ref : (1, Tt, Ts, C)  input block (also the residual)
    # o_ref : (1, Tt, Ts, C)
    # xp_ref: (Tt + pad, Ts + 2*pad, C) VMEM scratch (padded conv input, reused)
    _, tt, ts, c = x_ref.shape
    pad = dilation * (ksize - 1) // 2

    # ---- build padded conv1 input in VMEM (top pad only: causal taps never look down)
    xp_ref[...] = jnp.zeros_like(xp_ref)
    x = x_ref[0]                                                     # (Tt, Ts, C)
    xp_ref[pad:pad + tt, pad:pad + ts, :] = x

    # ---- conv1: gated conv + sigmoid gate + ReLU (single MXU matmul)
    h1 = _gated_conv(xp_ref, w1_ref, b1_ref, tt, ts, c, ksize, dilation)

    # ---- conv2: reuse the scratch; pad strips are still zero
    xp_ref[pad:pad + tt, pad:pad + ts, :] = h1.reshape(tt, ts, c)
    h2 = _gated_conv(xp_ref, w2_ref, b2_ref, tt, ts, c, ksize, dilation)

    # ---- residual + ReLU + LayerNormalization over channels (torch.std, unbiased)
    z = jnp.maximum(h2 + x.reshape(tt * ts, c), 0.0)                 # (Tt*Ts, C)
    mu = jnp.mean(z, axis=-1, keepdims=True)
    diff = z - mu
    var = jnp.sum(diff * diff, axis=-1, keepdims=True) / (c - 1)
    inv_std = pl.reciprocal(jnp.sqrt(var) + eps, approx=False)
    out = diff * inv_std * g_ref[...] + bt_ref[...]
    o_ref[...] = out.reshape(1, tt, ts, c)                           # one full-tile store


def _pack_causal_weights(w, ksize):
    """(2*Cout, Cin, KH, KW) torch conv weight -> (n_taps*Cin, 2*Cout) im2col matrix.

    Only the causal rows kh <= ksize//2 are kept (MaskedConv2d zeroes the rest),
    so causality is enforced structurally and the zero taps cost nothing.
    """
    cout2, cin, _, kw_ = w.shape
    n_kh = ksize // 2 + 1
    w_c = w[:, :, :n_kh, :]                                          # (2C, Cin, n_kh, KW)
    return jnp.transpose(w_c, (2, 3, 1, 0)).reshape(n_kh * kw_ * cin, cout2)


def gated_block_fused(x_nhwc, params, *, kernel_size, dilation, eps=1e-3):
    """Fused GatedBlock forward on NHWC input (eval mode)."""
    assert kernel_size % 2 == 1, "even kernel_size changes 'same' padding semantics"
    n, tt, ts, c = x_nhwc.shape
    cout2, cin = params["w1"].shape[0], params["w1"].shape[1]
    assert cin == c and cout2 == 2 * c, "residual requires in_channels == out_channels"

    pad = dilation * (kernel_size - 1) // 2
    n_taps = (kernel_size // 2 + 1) * kernel_size

    w1 = _pack_causal_weights(params["w1"], kernel_size)
    w2 = _pack_causal_weights(params["w2"], kernel_size)
    b1 = params["b1"].reshape(1, 2 * c)
    b2 = params["b2"].reshape(1, 2 * c)
    gamma = params["gamma"].reshape(1, c)
    beta = params["beta"].reshape(1, c)

    kernel = functools.partial(_gated_block_kernel, ksize=kernel_size,
                               dilation=dilation, eps=eps)

    # Advisory scheduling hints.
    flops = 2 * 2 * n * tt * ts * (n_taps * c) * (2 * c)             # two gated convs
    transcendentals = n * tt * ts * (2 * c + 2)                      # sigmoids + sqrt/recip
    bytes_accessed = 4 * (2 * n * tt * ts * c + 2 * n_taps * c * 2 * c + 6 * c)

    block_bytes = 4 * (2 * tt * ts * c + (tt + pad) * (ts + 2 * pad) * c
                       + 2 * n_taps * c * 2 * c)
    vmem_limit = int(min(48 * 1024 * 1024, max(16 * 1024 * 1024, 8 * block_bytes)))

    return pl.pallas_call(
        kernel,
        out_shape=jax.ShapeDtypeStruct((n, tt, ts, c), jnp.float32),
        grid=(n,),
        in_specs=[
            pl.BlockSpec((1, tt, ts, c), lambda i: (i, 0, 0, 0)),     # x / residual
            pl.BlockSpec((n_taps * c, 2 * c), lambda i: (0, 0)),      # w1 (im2col)
            pl.BlockSpec((1, 2 * c), lambda i: (0, 0)),               # b1
            pl.BlockSpec((n_taps * c, 2 * c), lambda i: (0, 0)),      # w2 (im2col)
            pl.BlockSpec((1, 2 * c), lambda i: (0, 0)),               # b2
            pl.BlockSpec((1, c), lambda i: (0, 0)),                   # gamma (a_2)
            pl.BlockSpec((1, c), lambda i: (0, 0)),                   # beta  (b_2)
        ],
        out_specs=pl.BlockSpec((1, tt, ts, c), lambda i: (i, 0, 0, 0)),
        scratch_shapes=[pltpu.VMEM((tt + pad, ts + 2 * pad, c), jnp.float32)],
        compiler_params=pltpu.CompilerParams(
            dimension_semantics=("parallel",),
            vmem_limit_bytes=vmem_limit),
        cost_estimate=pl.CostEstimate(flops=flops,
                                      transcendentals=transcendentals,
                                      bytes_accessed=bytes_accessed),
    )(x_nhwc, w1, b1, w2, b2, gamma, beta)


# ----------------------------------------------------------------------------
# GatedBlock.forward (eval mode), NCHW boundary like the PyTorch module
# ----------------------------------------------------------------------------
def gated_block_forward(x_nchw, params, *, kernel_size, dilation, drop_rate=0.0):
    x = jnp.transpose(x_nchw, (0, 2, 3, 1))                          # NCHW -> NHWC
    out = gated_block_fused(x, params, kernel_size=kernel_size, dilation=dilation)
    # dropout: identity at inference time (see TODO at top for training mode)
    return jnp.transpose(out, (0, 3, 1, 2))                          # NHWC -> NCHW


# ----------------------------------------------------------------------------
# Pure-JAX reference for validation
# ----------------------------------------------------------------------------
def _reference(x_nchw, params, kernel_size, dilation, eps=1e-3):
    x = jnp.transpose(x_nchw, (0, 2, 3, 1))

    def gconv(h, w, b):
        pad = dilation * (kernel_size - 1) // 2
        w_hwio = jnp.transpose(w, (2, 3, 1, 0))
        y = jax.lax.conv_general_dilated(
            h, w_hwio, window_strides=(1, 1),
            padding=[(pad, pad), (pad, pad)],
            rhs_dilation=(dilation, dilation),
            dimension_numbers=("NHWC", "HWIO", "NHWC"))
        y = y + b
        cout = w.shape[0] // 2
        gate, out = y[..., :cout], y[..., cout:]
        return jnp.maximum(jax.nn.sigmoid(gate) * out, 0.0)

    res = x
    h = gconv(x, params["w1"], params["b1"])
    h = gconv(h, params["w2"], params["b2"])
    z = jnp.maximum(h + res, 0.0)
    d = z.shape[-1]
    mu = jnp.mean(z, axis=-1, keepdims=True)
    diff = z - mu
    sigma = jnp.sqrt(jnp.sum(diff * diff, axis=-1, keepdims=True) / (d - 1))
    ln = diff / (sigma + eps)
    out = ln * params["gamma"] + params["beta"]
    return jnp.transpose(out, (0, 3, 1, 2))


if __name__ == "__main__":
    # Small shapes consistent with the module: residual requires Cin == Cout.
    N, C, Tt, Ts = 2, 8, 8, 8
    kernel_size, dilation, groups, bias, drop_rate = 3, 1, 1, True, 0.1
    assert groups == 1  # TODO(synk): grouped conv not implemented

    key = jax.random.PRNGKey(0)
    k1, k2, k3, k4, kx = jax.random.split(key, 5)
    w1 = 0.1 * jax.random.normal(k1, (2 * C, C, kernel_size, kernel_size), jnp.float32)
    b1 = 0.1 * jax.random.normal(k2, (2 * C,), jnp.float32)
    w2 = 0.1 * jax.random.normal(k3, (2 * C, C, kernel_size, kernel_size), jnp.float32)
    b2 = 0.1 * jax.random.normal(k4, (2 * C,), jnp.float32)

    # MaskedConv2d causal mask (needed by the XLA reference; the Pallas kernel
    # enforces this structurally by never touching rows kh > kernel_size//2).
    causal = (jnp.arange(kernel_size) <= kernel_size // 2).astype(jnp.float32)
    w1 = w1 * causal[None, None, :, None]
    w2 = w2 * causal[None, None, :, None]

    params = dict(
        w1=w1, b1=b1, w2=w2, b2=b2,
        gamma=jnp.ones((C,), jnp.float32),   # LayerNormalization a_2
        beta=jnp.zeros((C,), jnp.float32),   # LayerNormalization b_2
    )

    x = jax.random.normal(kx, (N, C, Tt, Ts), jnp.float32)   # NCHW, like PyTorch

    out = gated_block_forward(x, params, kernel_size=kernel_size,
                              dilation=dilation, drop_rate=drop_rate)
    out = jax.block_until_ready(out)

    ref = _reference(x, params, kernel_size, dilation)
    assert out.shape == (N, C, Tt, Ts)
    assert jnp.allclose(out, ref, atol=1e-4, rtol=1e-4), "mismatch vs JAX reference"
    print("KERNEL_OK")
</pallas_src>

<mosaic_0001>
module attributes {stable_mosaic.version = 11 : i64} {
  func.func @_gated_block_kernel(%arg0: i32, %arg1: memref<1x8x8x8xf32, #tpu.memory_space<vmem>>, %arg2: memref<48x16xf32, #tpu.memory_space<vmem>>, %arg3: memref<1x16xf32, #tpu.memory_space<vmem>>, %arg4: memref<48x16xf32, #tpu.memory_space<vmem>>, %arg5: memref<1x16xf32, #tpu.memory_space<vmem>>, %arg6: memref<1x8xf32, #tpu.memory_space<vmem>>, %arg7: memref<1x8xf32, #tpu.memory_space<vmem>>, %arg8: memref<1x8x8x8xf32, #tpu.memory_space<vmem>>, %arg9: memref<9x10x8xf32, #tpu.memory_space<vmem>>) attributes {dimension_semantics = [#tpu.dimension_semantics<parallel>], iteration_bounds = array<i64: 2>, scalar_prefetch = 0 : i64, scratch_operands = 1 : i64, tpu.core_type = #tpu.core_type<tc>, window_params = [{transform_indices = @transform_0, window_bounds = array<i64: 1, 8, 8, 8>}, {pipeline_mode = #tpu.pipeline_mode<synchronous>, transform_indices = @transform_1, window_bounds = array<i64: 48, 16>}, {pipeline_mode = #tpu.pipeline_mode<synchronous>, transform_indices = @transform_2, window_bounds = array<i64: 1, 16>}, {pipeline_mode = #tpu.pipeline_mode<synchronous>, transform_indices = @transform_3, window_bounds = array<i64: 48, 16>}, {pipeline_mode = #tpu.pipeline_mode<synchronous>, transform_indices = @transform_4, window_bounds = array<i64: 1, 16>}, {pipeline_mode = #tpu.pipeline_mode<synchronous>, transform_indices = @transform_5, window_bounds = array<i64: 1, 8>}, {pipeline_mode = #tpu.pipeline_mode<synchronous>, transform_indices = @transform_6, window_bounds = array<i64: 1, 8>}, {transform_indices = @transform_7, window_bounds = array<i64: 1, 8, 8, 8>}]} {
    %cst = arith.constant 0.000000e+00 : f32
    %0 = vector.broadcast %cst : f32 to vector<9x10x8xf32>
    %c0 = arith.constant 0 : index
    %c0_0 = arith.constant 0 : index
    %c0_1 = arith.constant 0 : index
    %1 = vector.load %arg9[%c0, %c0_0, %c0_1] : memref<9x10x8xf32, #tpu.memory_space<vmem>>, vector<9x10x8xf32>
    tpu.vector_store %arg9[%c0, %c0_0, %c0_1], %0 {strides = array<i32>} : memref<9x10x8xf32, #tpu.memory_space<vmem>>, vector<9x10x8xf32>,
    %c0_2 = arith.constant 0 : index
    %c0_3 = arith.constant 0 : index
    %c0_4 = arith.constant 0 : index
    %c0_5 = arith.constant 0 : index
    %2 = vector.load %arg1[%c0_2, %c0_3, %c0_4, %c0_5] : memref<1x8x8x8xf32, #tpu.memory_space<vmem>>, vector<1x8x8x8xf32>
    %3 = vector.shape_cast %2 : vector<1x8x8x8xf32> to vector<8x8x8xf32>
    %c1 = arith.constant 1 : index
    %c1_6 = arith.constant 1 : index
    %c0_7 = arith.constant 0 : index
    %4 = vector.load %arg9[%c1, %c1_6, %c0_7] : memref<9x10x8xf32, #tpu.memory_space<vmem>>, vector<8x8x8xf32>
    tpu.vector_store %arg9[%c1, %c1_6, %c0_7], %3 {strides = array<i32>} : memref<9x10x8xf32, #tpu.memory_space<vmem>>, vector<8x8x8xf32>,
    %c0_8 = arith.constant 0 : index
    %c0_9 = arith.constant 0 : index
    %c0_10 = arith.constant 0 : index
    %5 = vector.load %arg9[%c0_8, %c0_9, %c0_10] : memref<9x10x8xf32, #tpu.memory_space<vmem>>, vector<8x8x8xf32>
    %6 = vector.shape_cast %5 : vector<8x8x8xf32> to vector<64x8xf32>
    %c0_11 = arith.constant 0 : index
    %c1_12 = arith.constant 1 : index
    %c0_13 = arith.constant 0 : index
    %7 = vector.load %arg9[%c0_11, %c1_12, %c0_13] : memref<9x10x8xf32, #tpu.memory_space<vmem>>, vector<8x8x8xf32>
    %8 = vector.shape_cast %7 : vector<8x8x8xf32> to vector<64x8xf32>
    %c0_14 = arith.constant 0 : index
    %c2 = arith.constant 2 : index
    %c0_15 = arith.constant 0 : index
    %9 = vector.load %arg9[%c0_14, %c2, %c0_15] : memref<9x10x8xf32, #tpu.memory_space<vmem>>, vector<8x8x8xf32>
    %10 = vector.shape_cast %9 : vector<8x8x8xf32> to vector<64x8xf32>
    %c1_16 = arith.constant 1 : index
    %c0_17 = arith.constant 0 : index
    %c0_18 = arith.constant 0 : index
    %11 = vector.load %arg9[%c1_16, %c0_17, %c0_18] : memref<9x10x8xf32, #tpu.memory_space<vmem>>, vector<8x8x8xf32>
    %12 = vector.shape_cast %11 : vector<8x8x8xf32> to vector<64x8xf32>
    %c1_19 = arith.constant 1 : index
    %c1_20 = arith.constant 1 : index
    %c0_21 = arith.constant 0 : index
    %13 = vector.load %arg9[%c1_19, %c1_20, %c0_21] : memref<9x10x8xf32, #tpu.memory_space<vmem>>, vector<8x8x8xf32>
    %14 = vector.shape_cast %13 : vector<8x8x8xf32> to vector<64x8xf32>
    %c1_22 = arith.constant 1 : index
    %c2_23 = arith.constant 2 : index
    %c0_24 = arith.constant 0 : index
    %15 = vector.load %arg9[%c1_22, %c2_23, %c0_24] : memref<9x10x8xf32, #tpu.memory_space<vmem>>, vector<8x8x8xf32>
    %16 = vector.shape_cast %15 : vector<8x8x8xf32> to vector<64x8xf32>
    %17 = tpu.concatenate %6, %8, %10, %12, %14, %16 in 1 : vector<64x8xf32>, vector<64x8xf32>, vector<64x8xf32>, vector<64x8xf32>, vector<64x8xf32>, vector<64x8xf32> -> vector<64x48xf32>
    %c0_25 = arith.constant 0 : index
    %c0_26 = arith.constant 0 : index
    %18 = vector.load %arg2[%c0_25, %c0_26] : memref<48x16xf32, #tpu.memory_space<vmem>>, vector<48x16xf32>
    %cst_27 = arith.constant dense<0.000000e+00> : vector<64x16xf32>
    %19 = tpu.matmul %17, %18, %cst_27 {dimension_numbers = #tpu.dot_dimension_numbers<[1], [0], [0], [1], [0, 0, 1, 1], [], []>} : vector<64x48xf32>, vector<48x16xf32>, vector<64x16xf32> -> vector<64x16xf32>
    %c0_28 = arith.constant 0 : index
    %c0_29 = arith.constant 0 : index
    %20 = vector.load %arg3[%c0_28, %c0_29] : memref<1x16xf32, #tpu.memory_space<vmem>>, vector<1x16xf32>
    %21 = vector.broadcast %20 : vector<1x16xf32> to vector<64x16xf32>
    %22 = arith.addf %19, %21 : vector<64x16xf32>
    %23 = vector.extract_strided_slice %22 {offsets = [0, 0], sizes = [64, 8], strides = [1, 1]} : vector<64x16xf32> to vector<64x8xf32>
    %24 = vector.extract_strided_slice %22 {offsets = [0, 8], sizes = [64, 8], strides = [1, 1]} : vector<64x16xf32> to vector<64x8xf32>
    %25 = arith.negf %23 : vector<64x8xf32>
    %26 = math.exp %25 : vector<64x8xf32>
    %cst_30 = arith.constant 1.000000e+00 : f32
    %27 = vector.broadcast %cst_30 : f32 to vector<64x8xf32>
    %28 = arith.addf %27, %26 : vector<64x8xf32>
    %29 = arith.divf %27, %28 : vector<64x8xf32>
    %30 = arith.mulf %29, %24 : vector<64x8xf32>
    %cst_31 = arith.constant 0.000000e+00 : f32
    %31 = vector.broadcast %cst_31 : f32 to vector<64x8xf32>
    %32 = arith.maximumf %30, %31 : vector<64x8xf32>
    %33 = vector.shape_cast %32 : vector<64x8xf32> to vector<8x8x8xf32>
    %c1_32 = arith.constant 1 : index
    %c1_33 = arith.constant 1 : index
    %c0_34 = arith.constant 0 : index
    %34 = vector.load %arg9[%c1_32, %c1_33, %c0_34] : memref<9x10x8xf32, #tpu.memory_space<vmem>>, vector<8x8x8xf32>
    tpu.vector_store %arg9[%c1_32, %c1_33, %c0_34], %33 {strides = array<i32>} : memref<9x10x8xf32, #tpu.memory_space<vmem>>, vector<8x8x8xf32>,
    %c0_35 = arith.constant 0 : index
    %c0_36 = arith.constant 0 : index
    %c0_37 = arith.constant 0 : index
    %35 = vector.load %arg9[%c0_35, %c0_36, %c0_37] : memref<9x10x8xf32, #tpu.memory_space<vmem>>, vector<8x8x8xf32>
    %36 = vector.shape_cast %35 : vector<8x8x8xf32> to vector<64x8xf32>
    %c0_38 = arith.constant 0 : index
    %c1_39 = arith.constant 1 : index
    %c0_40 = arith.constant 0 : index
    %37 = vector.load %arg9[%c0_38, %c1_39, %c0_40] : memref<9x10x8xf32, #tpu.memory_space<vmem>>, vector<8x8x8xf32>
    %38 = vector.shape_cast %37 : vector<8x8x8xf32> to vector<64x8xf32>
    %c0_41 = arith.constant 0 : index
    %c2_42 = arith.constant 2 : index
    %c0_43 = arith.constant 0 : index
    %39 = vector.load %arg9[%c0_41, %c2_42, %c0_43] : memref<9x10x8xf32, #tpu.memory_space<vmem>>, vector<8x8x8xf32>
    %40 = vector.shape_cast %39 : vector<8x8x8xf32> to vector<64x8xf32>
    %c1_44 = arith.constant 1 : index
    %c0_45 = arith.constant 0 : index
    %c0_46 = arith.constant 0 : index
    %41 = vector.load %arg9[%c1_44, %c0_45, %c0_46] : memref<9x10x8xf32, #tpu.memory_space<vmem>>, vector<8x8x8xf32>
    %42 = vector.shape_cast %41 : vector<8x8x8xf32> to vector<64x8xf32>
    %c1_47 = arith.constant 1 : index
    %c1_48 = arith.constant 1 : index
    %c0_49 = arith.constant 0 : index
    %43 = vector.load %arg9[%c1_47, %c1_48, %c0_49] : memref<9x10x8xf32, #tpu.memory_space<vmem>>, vector<8x8x8xf32>
    %44 = vector.shape_cast %43 : vector<8x8x8xf32> to vector<64x8xf32>
    %c1_50 = arith.constant 1 : index
    %c2_51 = arith.constant 2 : index
    %c0_52 = arith.constant 0 : index
    %45 = vector.load %arg9[%c1_50, %c2_51, %c0_52] : memref<9x10x8xf32, #tpu.memory_space<vmem>>, vector<8x8x8xf32>
    %46 = vector.shape_cast %45 : vector<8x8x8xf32> to vector<64x8xf32>
    %47 = tpu.concatenate %36, %38, %40, %42, %44, %46 in 1 : vector<64x8xf32>, vector<64x8xf32>, vector<64x8xf32>, vector<64x8xf32>, vector<64x8xf32>, vector<64x8xf32> -> vector<64x48xf32>
    %c0_53 = arith.constant 0 : index
    %c0_54 = arith.constant 0 : index
    %48 = vector.load %arg4[%c0_53, %c0_54] : memref<48x16xf32, #tpu.memory_space<vmem>>, vector<48x16xf32>
    %cst_55 = arith.constant dense<0.000000e+00> : vector<64x16xf32>
    %49 = tpu.matmul %47, %48, %cst_55 {dimension_numbers = #tpu.dot_dimension_numbers<[1], [0], [0], [1], [0, 0, 1, 1], [], []>} : vector<64x48xf32>, vector<48x16xf32>, vector<64x16xf32> -> vector<64x16xf32>
    %c0_56 = arith.constant 0 : index
    %c0_57 = arith.constant 0 : index
    %50 = vector.load %arg5[%c0_56, %c0_57] : memref<1x16xf32, #tpu.memory_space<vmem>>, vector<1x16xf32>
    %51 = vector.broadcast %50 : vector<1x16xf32> to vector<64x16xf32>
    %52 = arith.addf %49, %51 : vector<64x16xf32>
    %53 = vector.extract_strided_slice %52 {offsets = [0, 0], sizes = [64, 8], strides = [1, 1]} : vector<64x16xf32> to vector<64x8xf32>
    %54 = vector.extract_strided_slice %52 {offsets = [0, 8], sizes = [64, 8], strides = [1, 1]} : vector<64x16xf32> to vector<64x8xf32>
    %55 = arith.negf %53 : vector<64x8xf32>
    %56 = math.exp %55 : vector<64x8xf32>
    %cst_58 = arith.constant 1.000000e+00 : f32
    %57 = vector.broadcast %cst_58 : f32 to vector<64x8xf32>
    %58 = arith.addf %57, %56 : vector<64x8xf32>
    %59 = arith.divf %57, %58 : vector<64x8xf32>
    %60 = arith.mulf %59, %54 : vector<64x8xf32>
    %cst_59 = arith.constant 0.000000e+00 : f32
    %61 = vector.broadcast %cst_59 : f32 to vector<64x8xf32>
    %62 = arith.maximumf %60, %61 : vector<64x8xf32>
    %63 = vector.shape_cast %3 : vector<8x8x8xf32> to vector<64x8xf32>
    %64 = arith.addf %62, %63 : vector<64x8xf32>
    %cst_60 = arith.constant 0.000000e+00 : f32
    %65 = vector.broadcast %cst_60 : f32 to vector<64x8xf32>
    %66 = arith.maximumf %64, %65 : vector<64x8xf32>
    %cst_61 = arith.constant dense<0.000000e+00> : vector<64xf32>
    %67 = vector.multi_reduction <add>, %66, %cst_61 [1] : vector<64x8xf32> to vector<64xf32>
    %68 = vector.shape_cast %67 : vector<64xf32> to vector<64x1xf32>
    %cst_62 = arith.constant 8.000000e+00 : f32
    %69 = vector.broadcast %cst_62 : f32 to vector<64x1xf32>
    %70 = arith.divf %68, %69 : vector<64x1xf32>
    %71 = vector.broadcast %70 : vector<64x1xf32> to vector<64x8xf32>
    %72 = arith.subf %66, %71 : vector<64x8xf32>
    %73 = arith.mulf %72, %72 : vector<64x8xf32>
    %cst_63 = arith.constant dense<0.000000e+00> : vector<64xf32>
    %74 = vector.multi_reduction <add>, %73, %cst_63 [1] : vector<64x8xf32> to vector<64xf32>
    %75 = vector.shape_cast %74 : vector<64xf32> to vector<64x1xf32>
    %cst_64 = arith.constant 7.000000e+00 : f32
    %76 = vector.broadcast %cst_64 : f32 to vector<64x1xf32>
    %77 = arith.divf %75, %76 : vector<64x1xf32>
    %78 = math.sqrt %77 : vector<64x1xf32>
    %cst_65 = arith.constant 1.000000e-03 : f32
    %79 = vector.broadcast %cst_65 : f32 to vector<64x1xf32>
    %80 = arith.addf %78, %79 : vector<64x1xf32>
    %81 = tpu.reciprocal %80 : vector<64x1xf32> -> vector<64x1xf32>
    %82 = vector.broadcast %81 : vector<64x1xf32> to vector<64x8xf32>
    %83 = arith.mulf %72, %82 : vector<64x8xf32>
    %c0_66 = arith.constant 0 : index
    %c0_67 = arith.constant 0 : index
    %84 = vector.load %arg6[%c0_66, %c0_67] : memref<1x8xf32, #tpu.memory_space<vmem>>, vector<1x8xf32>
    %85 = vector.broadcast %84 : vector<1x8xf32> to vector<64x8xf32>
    %86 = arith.mulf %83, %85 : vector<64x8xf32>
    %c0_68 = arith.constant 0 : index
    %c0_69 = arith.constant 0 : index
    %87 = vector.load %arg7[%c0_68, %c0_69] : memref<1x8xf32, #tpu.memory_space<vmem>>, vector<1x8xf32>
    %88 = vector.broadcast %87 : vector<1x8xf32> to vector<64x8xf32>
    %89 = arith.addf %86, %88 : vector<64x8xf32>
    %90 = vector.shape_cast %89 : vector<64x8xf32> to vector<1x8x8x8xf32>
    %c0_70 = arith.constant 0 : index
    %c0_71 = arith.constant 0 : index
    %c0_72 = arith.constant 0 : index
    %c0_73 = arith.constant 0 : index
    %91 = vector.load %arg8[%c0_70, %c0_71, %c0_72, %c0_73] : memref<1x8x8x8xf32, #tpu.memory_space<vmem>>, vector<1x8x8x8xf32>
    tpu.vector_store %arg8[%c0_70, %c0_71, %c0_72, %c0_73], %90 {strides = array<i32>} : memref<1x8x8x8xf32, #tpu.memory_space<vmem>>, vector<1x8x8x8xf32>,
    return
  }
  func.func @transform_0(%arg0: i32) -> (i32, i32, i32, i32) {
    %c0_i32 = arith.constant 0 : i32
    %c0_i32_0 = arith.constant 0 : i32
    %c0_i32_1 = arith.constant 0 : i32
    %c0_i32_2 = arith.constant 0 : i32
    return %arg0, %c0_i32, %c0_i32_0, %c0_i32_1 : i32, i32, i32, i32
  }
  func.func @transform_1(%arg0: i32) -> (i32, i32) {
    %c0_i32 = arith.constant 0 : i32
    %c0_i32_0 = arith.constant 0 : i32
    %c0_i32_1 = arith.constant 0 : i32
    return %c0_i32, %c0_i32_0 : i32, i32
  }
  func.func @transform_2(%arg0: i32) -> (i32, i32) {
    %c0_i32 = arith.constant 0 : i32
    %c0_i32_0 = arith.constant 0 : i32
    %c0_i32_1 = arith.constant 0 : i32
    return %c0_i32, %c0_i32_0 : i32, i32
  }
  func.func @transform_3(%arg0: i32) -> (i32, i32) {
    %c0_i32 = arith.constant 0 : i32
    %c0_i32_0 = arith.constant 0 : i32
    %c0_i32_1 = arith.constant 0 : i32
    return %c0_i32, %c0_i32_0 : i32, i32
  }
  func.func @transform_4(%arg0: i32) -> (i32, i32) {
    %c0_i32 = arith.constant 0 : i32
    %c0_i32_0 = arith.constant 0 : i32
    %c0_i32_1 = arith.constant 0 : i32
    return %c0_i32, %c0_i32_0 : i32, i32
  }
  func.func @transform_5(%arg0: i32) -> (i32, i32) {
    %c0_i32 = arith.constant 0 : i32
    %c0_i32_0 = arith.constant 0 : i32
    %c0_i32_1 = arith.constant 0 : i32
    return %c0_i32, %c0_i32_0 : i32, i32
  }
  func.func @transform_6(%arg0: i32) -> (i32, i32) {
    %c0_i32 = arith.constant 0 : i32
    %c0_i32_0 = arith.constant 0 : i32
    %c0_i32_1 = arith.constant 0 : i32
    return %c0_i32, %c0_i32_0 : i32, i32
  }
  func.func @transform_7(%arg0: i32) -> (i32, i32, i32, i32) {
    %c0_i32 = arith.constant 0 : i32
    %c0_i32_0 = arith.constant 0 : i32
    %c0_i32_1 = arith.constant 0 : i32
    %c0_i32_2 = arith.constant 0 : i32
    return %arg0, %c0_i32, %c0_i32_0, %c0_i32_1 : i32, i32, i32, i32
  }
}

</mosaic_0001>

<bundles_post_ra>
// kernel: tpu_custom_call.1
= control target key start
LH: loop header
LB: loop body
LE: loop exit
PB: predicated region body
PF: predicated region fallthrough
CT: control target
= control target key end

     0   :  { %12 = vsyncpa [#allocation4], 0  ;;  %s2709_s0 = inlined_call_operand.hbm [shape: f32[2,8,8,8], index: 0, kind: input, shape index: {}]   ;;  %s2710_s1 = inlined_call_operand.vmem [shape: f32[48,16], index: 1, kind: input, shape index: {}]   ;;  %s2711_s2 = inlined_call_operand.vmem [shape: f32[1,16], index: 2, kind: input, shape index: {}]   ;;  %s2712_s3 = inlined_call_operand.vmem [shape: f32[48,16], index: 3, kind: input, shape index: {}]   ;;  %s2713_s4 = inlined_call_operand.vmem [shape: f32[1,16], index: 4, kind: input, shape index: {}]   ;;  %s2714_s5 = inlined_call_operand.vmem [shape: f32[1,8], index: 5, kind: input, shape index: {}]   ;;  %s2715_s6 = inlined_call_operand.vmem [shape: f32[1,8], index: 6, kind: input, shape index: {}]   ;;  %s2716_s7 = inlined_call_operand.hbm [shape: f32[2,8,8,8], index: 7, kind: output, shape index: {}]  }
   0x1   :  { %14 = vsyncpa [#allocation4 + $0x1], 0 }
   0x2   :  { %15 = vsyncpa [#allocation5], 0 }
   0x3   :  { %17 = vsyncpa [#allocation5 + $0x1], 0  ;;  %s2048_s24 = smov 0   ;;  %s2050_s25 = smov 0  }
   0x4   :  { %s2052_s26 = smov 0   ;;  %s2054_s27 = smov 0  }
   0x5 LB: > { %s2069_s28 = sadd.s32 4294967295, %s1994_s27   ;;  %s1622_s29 = sadd.s32 4294967294, %s1994_s27   ;;  %s1994_s27 = sphi %s2054_s27, %s2731_s27   ;;  %s1990_s26 = sphi %s2052_s26, %s2730_s26   ;;  %s1986_s25 = sphi %s2050_s25, %s2729_s25   ;;  %s1982_s24 = sphi %s2048_s24, %s2728_s24  }
   0x6   : > { %s2073_s30 = sadd.s32 1, %s1994_s27   ;;  %s30_s8 = sadd.s32 1, %s1990_s26 }
   0x7   : > { %s27_s9 = ssub.s32 %s1994_s27, %s2073_s30  ;;  %p37_p0 = scmp.ne.s32.totalorder %s1990_s26, %s1986_s25 }
   0x8   : > { %p28_p1 = scmp.eq.s32.totalorder %s27_s9, 0  ;;  %p38_p2 = scmp.eq.s32.totalorder %s1994_s27, 0 }
   0x9   : > { %p43_p3 = scmp.ne.s32.totalorder %s1986_s25, %s1982_s24  ;;  %p44_p4 = scmp.eq.s32.totalorder %s2069_s28, 0 }
   0xa   : > { %s2085_s10 = scalar_select %p28_p1, %s1990_s26, %s30_s8  }
   0xb   : > { %p2087_p5 = por %p38_p2, %p37_p0  ;;  %p2091_p6 = por %p44_p4, %p43_p3 }
   0xc   : > { %p193_p7 = scmp.eq.s32.totalorder %s2069_s28, 1  ;;  %p199_p8 = scmp.eq.s32.totalorder %s1622_s29, 1 }
   0xd   : > { %s2720_s12 = scalar_select %p2091_p6, 1, 0 }
   0xe   : > { %p1762_p10 = scmp.lt.s32.totalorder %s1994_s27, 2  ;;  %p2098_p11 = por %p193_p7, %p37_p0 }
   0xf   : > { %p2102_p12 = por %p199_p8, %p43_p3  ;;  %s237_s15 = sand.u32 1, %s1990_s26  }
  0x10   : > { %s2721_s13 = scalar_select %p2098_p11, 1, 0 }
  0x11   : > { %s2722_s14 = scalar_select %p2102_p12, 1, 0 }
  0x12   : > { %s1672_s16 = sshll.u32 %s1994_s27, 10  ;;  %s1625_s17 = sshll.u32 %s237_s15, 6 }
  0x13   : > { %s2111_s20 = scalar_lea.hbm %s2709_s0, %s1672_s16  ;;  %s241_s21 = scalar_lea.vmem [#allocation3], %s1625_s17 }
  0x14   : > { %s248_s22 = sshll.u32 %s241_s21, 4  ;;  %p2115_p13 = pnand %p1762_p10, %p2087_p5  ;;  %s2119_s22 = int_to_ptr.vmem [resolvable:$true] %s248_s22 }
  0x15   : > { %s2121_s29 = scalar_lea.sflag [#allocation4], %s237_s15  ;;  %s1902_s8 = scalar_lea.hbm %s2111_s20, 1024 }
  0x16   : > { %p1903_p0 = scmp.ne.s32.totalorder %s2111_s20, %s1902_s8  ;;  %p1904_p1 = pneg %p2115_p13 }
  0x17   : > { %s1907_s17 = scalar_lea.hbm %s2709_s0, 2048  ;;  %p1908_p4 = scmp.lt.s32.totalorder %s2111_s20, %s2709_s0 }
  0x18   : > { %p1905_p2 = pnand %p1904_p1, %p1903_p0  ;;  %p1909_p5 = scmp.lt.s32.totalorder %s1907_s17, %s1902_s8 }
  0x1a   : > { %p1906_p3 = pneg %p1905_p2  ;;  %p1910_p7 = por %p1909_p5, %p1908_p4 }
  0x1c   : > { %p1911_p8 = pnand %p1910_p7, %p1906_p3 }
  0x1e   : > { %1914 = shalt.err (!%p1911_p8)
}
  0x1f   : > { %s1915_s15 = scalar_lea.vmem %s2119_s22, 1024  ;;  %s1996_s19 = smov [#allocation3]  }
  0x20   : > { %p1916_p10 = scmp.ne.s32.totalorder %s2119_s22, %s1915_s15  ;;  %s1920_s21 = sshll.u32 %s1996_s19, 4  ;;  %s1921_s21 = int_to_ptr.vmem [resolvable:$false] %s1920_s21 }
  0x21   : > { %s1922_s9 = scalar_lea.vmem %s1921_s21, 2048  ;;  %p1923_p2 = scmp.lt.s32.totalorder %s2119_s22, %s1921_s21 }
  0x22   : > { %p1918_p9 = pnand %p1916_p10, %p1904_p1  ;;  %p1924_p12 = scmp.lt.s32.totalorder %s1922_s9, %s1915_s15 }
  0x24   : > { %p1919_p0 = pneg %p1918_p9  ;;  %p1925_p11 = por %p1924_p12, %p1923_p2 }
  0x26   : > { %p1926_p6 = pnand %p1925_p11, %p1919_p0 }
  0x28   : > { %1929 = shalt.err (!%p1926_p6)
}
  0x29   : > { %s1997_s8 = smov 128   ;;  %s1998_s16 = smov 8  }
  0x2a   : > { %1757 = dma.hbm_to_vmem [thread:$0]  (!%p2115_p13), %s2111_s20, 1024, %s2119_s22, %s2121_s29, %s1997_s8, %s1997_s8, %s1998_s16  }
  0x2b   : > { %p1628_p9 = scmp.ge.s32.totalorder %s1994_s27, 1  ;;  %p256_p1 = scmp.lt.s32.totalorder %s1994_s27, 3 }
  0x2d   : > { %p257_p3 = pnand %p1628_p9, %p256_p1 }
  0x2e   : > { %s2145_s17 = sand.u32 (!%p257_p3), 1, %s1986_s25   ;;  %p2724_p6 = scmp.ne.s32.totalorder (!%p257_p3), %s2720_s12, 0 }
  0x2f   : > { %260 = sbr.rel (%p257_p3) target bundleno = 1381 (0x565), region = 48  ;;  %s1629_s11 = sshll.u32 (!%p257_p3), %s2145_s17, 6 }
  0x30   : > { %s263_s18 = scalar_lea.sflag (!%p257_p3), [#allocation4], %s2145_s17  ;;  %s2151_s15 = scalar_lea.vmem (!%p257_p3), [#allocation3], %s1629_s11 }
  0x34   : > { %1973 = dma.done.wait (%p2724_p6), %s263_s18, 1024  }
  0x35   : > { %1975 = vsyncadd (%p2724_p6), %s263_s18, 4294966272  ;;  %vm297_vm0 = vcmask 64512   ;;  %vm299_vm1 = vcmask 58368   ;;  %v1999_v0 = vmov 0.0   ;;  %v2176_v1 = vld [vmem:[%s2151_s15] sm:$0xff]  ;;  %v2179_v2 = vld [vmem:[%s2151_s15 + $0x8] sm:$0xff] }
  0x36   : > { %298 = vst.msk [vmem:[#allocation2] sm:$0xff] %vm297_vm0, %v1999_v0  ;;  %301 = vst.msk [vmem:[#allocation2 + $0x10] sm:$0xff] %vm297_vm0, %v1999_v0  ;;  %v2182_v3 = vld [vmem:[%s2151_s15 + $0x10] sm:$0xff]  ;;  %v2195_v6 = vld [vmem:[%s2151_s15 + $0x18] sm:$0xff]  ;;  %s2000_s12 = smov 16   ;;  %s2001_s20 = smov 8  }
  0x37   : > { %300 = vst.msk [vmem:[#allocation2 + $0x8] sm:$0x3] %vm299_vm1, %v1999_v0  ;;  %302 = vst.msk [vmem:[#allocation2 + $0x18] sm:$0x3] %vm299_vm1, %v1999_v0  ;;  %v2204_v7 = vld [vmem:[%s2151_s15 + $0x20] sm:$0xff]  ;;  %v2207_v8 = vld [vmem:[%s2151_s15 + $0x28] sm:$0xff] }
  0x38   : > { %303 = vst.msk [vmem:[#allocation2 + $0x20] sm:$0xff] %vm297_vm0, %v1999_v0  ;;  %305 = vst.msk [vmem:[#allocation2 + $0x30] sm:$0xff] %vm297_vm0, %v1999_v0  ;;  %v2214_v9 = vld [vmem:[%s2151_s15 + $0x30] sm:$0xff]  ;;  %v2217_v10 = vld [vmem:[%s2151_s15 + $0x38] sm:$0xff]  ;;  %s2002_s21 = smov 24   ;;  %s2003_s16 = smov 32  }
  0x39   : > { %304 = vst.msk [vmem:[#allocation2 + $0x28] sm:$0x3] %vm299_vm1, %v1999_v0  ;;  %306 = vst.msk [vmem:[#allocation2 + $0x38] sm:$0x3] %vm299_vm1, %v1999_v0  ;;  %v591_v11 = vld [vmem:[%s2710_s1 + $0x28] sm:$0xff]  ;;  %v590_v12 = vld [vmem:[%s2710_s1 + $0x20] sm:$0xff] }
  0x3a   : > { %307 = vst.msk [vmem:[#allocation2 + $0x40] sm:$0xff] %vm297_vm0, %v1999_v0  ;;  %309 = vst.msk [vmem:[#allocation2 + $0x50] sm:$0xff] %vm297_vm0, %v1999_v0  ;;  %1702 = vmatprep.subr.mxu0 %v591_v11  ;;  %v589_v18 = vld [vmem:[%s2710_s1 + $0x18] sm:$0xff]  ;;  %v588_v19 = vld [vmem:[%s2710_s1 + $0x10] sm:$0xff]  ;;  %s2004_s29 = smov 40   ;;  %vm550_vm2 = vcmask 130048  }
  0x3b   : > { %308 = vst.msk [vmem:[#allocation2 + $0x48] sm:$0x3] %vm299_vm1, %v1999_v0  ;;  %310 = vst.msk [vmem:[#allocation2 + $0x58] sm:$0x3] %vm299_vm1, %v1999_v0  ;;  %1703 = vmatpush3.msra.mxu0 %v591_v11  ;;  %v587_v20 = vld [vmem:[%s2710_s1 + $0x8] sm:$0xff]  ;;  %v586_v23 = vld [vmem:[%s2710_s1] sm:$0xff] }
  0x3c   : > { %311 = vst.msk [vmem:[#allocation2 + $0x60] sm:$0xff] %vm297_vm0, %v1999_v0  ;;  %313 = vst.msk [vmem:[#allocation2 + $0x70] sm:$0xff] %vm297_vm0, %v1999_v0  ;;  %1704 = vmatprep.subr.mxu0 %v590_v12  ;;  %vm559_vm3 = vcmask 195584   ;;  %vm568_vm4 = vcmask 261120   ;;  %vm577_vm5 = vcmask 326656   ;;  %vm599_vm6 = vcmask 392192  }
  0x3d   : > { %312 = vst.msk [vmem:[#allocation2 + $0x68] sm:$0x3] %vm299_vm1, %v1999_v0  ;;  %314 = vst.msk [vmem:[#allocation2 + $0x78] sm:$0x3] %vm299_vm1, %v1999_v0  ;;  %1705 = vmatpush3.msra.mxu0 %v590_v12  ;;  %v2302_v45 = vld [vmem:[#allocation2] sm:$0xff]  ;;  %s2005_s15 = smov 120  }
  0x3e   : > { %315 = vst.msk [vmem:[#allocation2 + $0x80] sm:$0xff] %vm297_vm0, %v1999_v0  ;;  %v2184_v4 = vld [vmem:[#allocation2 + $0x2] sm:$0xff]  ;;  %326 = vst.msk [vmem:[#allocation2 + $0x11] sm:$0xff] %vm297_vm0, %v2176_v1  ;;  %1706 = vmatprep.subr.mxu0 %v589_v18  ;;  %s2621_s23 = scalar_lea.vmem [#allocation6], %s1629_s11  ;;  %s1673_s11 = sshll.u32 %s2069_s28, 10 }
  0x3f   : > { %316 = vst.msk [vmem:[#allocation2 + $0x88] sm:$0x3] %vm299_vm1, %v1999_v0  ;;  %v2186_v5 = vld [vmem:[#allocation2 + $0x1] sm:$0xff]  ;;  %422 = vrot.lane.b32.xlu1 %v2184_v4, %s2000_s12  ;;  %1707 = vmatpush3.msra.mxu0 %v589_v18  ;;  %s1549_s19 = sshll.u32 %s2621_s23, 4  ;;  %s2660_s18 = scalar_lea.hbm %s2716_s7, %s1673_s11  ;;  %s2663_s19 = int_to_ptr.vmem [resolvable:$true] %s1549_s19 }
  0x40   : > { %327 = vst.msk [vmem:[#allocation2 + $0x21] sm:$0xff] %vm297_vm0, %v2179_v2  ;;  %328 = vst.msk [vmem:[#allocation2 + $0x31] sm:$0xff] %vm297_vm0, %v2182_v3  ;;  %390 = vrot.lane.b32.xlu0 %v2186_v5, %s2001_s20  ;;  %1708 = vmatprep.subr.mxu0 %v588_v19  ;;  %s1536_s28 = scalar_lea.sflag [#allocation5], %s2145_s17  ;;  %p2725_p12 = scmp.ne.s32.totalorder %s2721_s13, 0 }
  0x41   : > { %329 = vst.msk [vmem:[#allocation2 + $0x41] sm:$0xff] %vm297_vm0, %v2195_v6  ;;  %330 = vst.msk [vmem:[#allocation2 + $0x51] sm:$0xff] %vm297_vm0, %v2204_v7  ;;  %1709 = vmatpush3.msra.mxu0 %v588_v19 }
  0x42   : > { %331 = vst.msk [vmem:[#allocation2 + $0x61] sm:$0xff] %vm297_vm0, %v2207_v8  ;;  %332 = vst.msk [vmem:[#allocation2 + $0x71] sm:$0xff] %vm297_vm0, %v2214_v9  ;;  %1710 = vmatprep.subr.mxu0 %v587_v20 }
  0x43   : > { %333 = vst.msk [vmem:[#allocation2 + $0x81] sm:$0xff] %vm297_vm0, %v2217_v10  ;;  %1711 = vmatpush3.msra.mxu0 %v587_v20 }
  0x44   : > { %1712 = vmatprep.subr.mxu0 %v586_v23 }
  0x45   : > { %v351_v13 = vld [vmem:[#allocation2 + $0x12] sm:$0xff]  ;;  %1713 = vmatpush3.msra.mxu0 %v586_v23 }
  0x46   : > { %v343_v14 = vld [vmem:[#allocation2 + $0x11] sm:$0xff]  ;;  %424 = vrot.lane.b32.xlu1 %v351_v13, %s2000_s12 }
  0x47   : > { %392 = vrot.lane.b32.xlu0 %v343_v14, %s2001_s20  ;;  %v2231_v15 = vld [vmem:[#allocation2 + $0x20] sm:$0xff]  ;;  %v2233_v16 = vld [vmem:[#allocation2 + $0x10] sm:$0xff] }
  0x48   : > { %v344_v17 = vld [vmem:[#allocation2 + $0x21] sm:$0xff]  ;;  %v345_v22 = vld [vmem:[#allocation2 + $0x31] sm:$0xff] }
  0x49   : > { %v352_v21 = vld [vmem:[#allocation2 + $0x22] sm:$0xff]  ;;  %v353_v24 = vld [vmem:[#allocation2 + $0x32] sm:$0xff] }
  0x4a   : > { %456 = vrot.lane.b32.xlu1 %v2231_v15, %s2002_s21  ;;  %v2259_v25 = vld [vmem:[#allocation2 + $0x40] sm:$0xff]  ;;  %v2261_v26 = vld [vmem:[#allocation2 + $0x30] sm:$0xff] }
  0x4b   : > { %454 = vrot.lane.b32.xlu0 %v2233_v16, %s2002_s21  ;;  %v346_v27 = vld [vmem:[#allocation2 + $0x41] sm:$0xff]  ;;  %v347_v29 = vld [vmem:[#allocation2 + $0x51] sm:$0xff] }
  0x4c   : > { %v354_v28 = vld [vmem:[#allocation2 + $0x42] sm:$0xff]  ;;  %v355_v30 = vld [vmem:[#allocation2 + $0x52] sm:$0xff] }
  0x4d   : > { %v2275_v31 = vld [vmem:[#allocation2 + $0x60] sm:$0xff]  ;;  %v2277_v32 = vld [vmem:[#allocation2 + $0x50] sm:$0xff] }
  0x4e   : > { %394 = vrot.lane.b32.xlu1 %v344_v17, %s2001_s20  ;;  %v348_v33 = vld [vmem:[#allocation2 + $0x61] sm:$0xff]  ;;  %v349_v35 = vld [vmem:[#allocation2 + $0x71] sm:$0xff] }
  0x4f   : > { %486 = vrot.lane.b32.xlu0 %v343_v14, %s2003_s16  ;;  %v356_v34 = vld [vmem:[#allocation2 + $0x62] sm:$0xff]  ;;  %v357_v36 = vld [vmem:[#allocation2 + $0x72] sm:$0xff] }
  0x50   : > { %v365_v37 = vld [vmem:[#allocation2 + $0x80] sm:$0xff]  ;;  %v2291_v38 = vld [vmem:[#allocation2 + $0x70] sm:$0xff] }
  0x51   : > { %v373_v39 = vld [vmem:[#allocation2 + $0x81] sm:$0xff] }
  0x52   : > { %518 = vrot.lane.b32.xlu1 %v351_v13, %s2004_s29  ;;  %v381_v40 = vld [vmem:[#allocation2 + $0x82] sm:$0xff] }
  0x53   : > { %488 = vrot.lane.b32.xlu0 %v344_v17, %s2003_s16 }
  0x56   : > { %426 = vrot.lane.b32.xlu1 %v352_v21, %s2000_s12 }
  0x57   : > { %396 = vrot.lane.b32.xlu0 %v345_v22, %s2001_s20 }
  0x5a   : > { %428 = vrot.lane.b32.xlu1 %v353_v24, %s2000_s12 }
  0x5b   : > { %520 = vrot.lane.b32.xlu0 %v352_v21, %s2004_s29 }
  0x5e   : > { %460 = vrot.lane.b32.xlu1 %v2259_v25, %s2002_s21 }
  0x5f   : > { %458 = vrot.lane.b32.xlu0 %v2261_v26, %s2002_s21 }
  0x62   : > { %398 = vrot.lane.b32.xlu1 %v346_v27, %s2001_s20 }
  0x63   : > { %490 = vrot.lane.b32.xlu0 %v345_v22, %s2003_s16 }
  0x66   : > { %522 = vrot.lane.b32.xlu1 %v353_v24, %s2004_s29 }
  0x67   : > { %492 = vrot.lane.b32.xlu0 %v346_v27, %s2003_s16 }
  0x6a   : > { %430 = vrot.lane.b32.xlu1 %v354_v28, %s2000_s12 }
  0x6b   : > { %400 = vrot.lane.b32.xlu0 %v347_v29, %s2001_s20 }
  0x6e   : > { %432 = vrot.lane.b32.xlu1 %v355_v30, %s2000_s12 }
  0x6f   : > { %524 = vrot.lane.b32.xlu0 %v354_v28, %s2004_s29 }
  0x72   : > { %464 = vrot.lane.b32.xlu1 %v2275_v31, %s2002_s21 }
  0x73   : > { %462 = vrot.lane.b32.xlu0 %v2277_v32, %s2002_s21 }
  0x76   : > { %402 = vrot.lane.b32.xlu1 %v348_v33, %s2001_s20 }
  0x77   : > { %494 = vrot.lane.b32.xlu0 %v347_v29, %s2003_s16 }
  0x7a   : > { %526 = vrot.lane.b32.xlu1 %v355_v30, %s2004_s29 }
  0x7b   : > { %496 = vrot.lane.b32.xlu0 %v348_v33, %s2003_s16 }
  0x7e   : > { %434 = vrot.lane.b32.xlu1 %v356_v34, %s2000_s12 }
  0x7f   : > { %404 = vrot.lane.b32.xlu0 %v349_v35, %s2001_s20 }
  0x82   : > { %436 = vrot.lane.b32.xlu1 %v357_v36, %s2000_s12 }
  0x83   : > { %528 = vrot.lane.b32.xlu0 %v356_v34, %s2004_s29 }
  0x86   : > { %468 = vrot.lane.b32.xlu1 %v365_v37, %s2002_s21 }
  0x87   : > { %466 = vrot.lane.b32.xlu0 %v2291_v38, %s2002_s21 }
  0x8a   : > { %500 = vrot.lane.b32.xlu1 %v373_v39, %s2003_s16 }
  0x8b   : > { %498 = vrot.lane.b32.xlu0 %v349_v35, %s2003_s16 }
  0x8e   : > { %532 = vrot.lane.b32.xlu1 %v381_v40, %s2004_s29 }
  0x8f   : > { %530 = vrot.lane.b32.xlu0 %v357_v36, %s2004_s29 }
  0x93   : > { %889 = vrot.lane.b32.xlu0 %v2186_v5, %s2001_s20 }
  0xb1   : > { %v423_v41 = vpop.permute.xlu1 %422 }
  0xb2   : > { %v391_v42 = vpop.permute.xlu0 %390 }
  0xb3   : > { %v542_v48 = vsel %vm297_vm0, %v2302_v45, %v391_v42 }
  0xb4   : > { %v551_v51 = vsel %vm550_vm2, %v542_v48, %v423_v41 }
  0xb8   : > { %v425_v43 = vpop.permute.xlu1 %424 }
  0xb9   : > { %v393_v44 = vpop.permute.xlu0 %392 }
  0xba   : > { %v543_v57 = vsel %vm297_vm0, %v2233_v16, %v393_v44 }
  0xbb   : > { %v552_v60 = vsel %vm550_vm2, %v543_v57, %v425_v43 }
  0xbc   : > { %v457_v46 = vpop.permute.xlu1 %456 }
  0xbd   : > { %v455_v47 = vpop.permute.xlu0 %454  ;;  %v561_v61 = vsel %vm559_vm3, %v552_v60, %v457_v46 }
  0xbe   : > { %v560_v52 = vsel %vm559_vm3, %v551_v51, %v455_v47 }
  0xc0   : > { %v395_v49 = vpop.permute.xlu1 %394 }
  0xc1   : > { %v487_v50 = vpop.permute.xlu0 %486  ;;  %v544_v13 = vsel %vm297_vm0, %v2231_v15, %v395_v49 }
  0xc2   : > { %v569_v53 = vsel %vm568_vm4, %v560_v52, %v487_v50 }
  0xc4   : > { %v519_v54 = vpop.permute.xlu1 %518 }
  0xc5   : > { %v489_v55 = vpop.permute.xlu0 %488  ;;  %v578_v56 = vsel %vm577_vm5, %v569_v53, %v519_v54 }
  0xc6   : > { %1714 = vmatprep.mubr.msk.f32.mxu0 %vm599_vm6, %v578_v56  ;;  %v570_v62 = vsel %vm568_vm4, %v561_v61, %v489_v55 }
  0xc8   : > { %v427_v58 = vpop.permute.xlu1 %426 }
  0xc9   : > { %v397_v59 = vpop.permute.xlu0 %396  ;;  %v553_v17 = vsel %vm550_vm2, %v544_v13, %v427_v58  ;;  %v1631_v13 = vld [vmem:[%s2711_s2] ss:$0 sm:$0xff] }
  0xca   : > { %v545_v27 = vsel %vm297_vm0, %v2261_v26, %v397_v59 }
  0xcc   : > { %v429_v63 = vpop.permute.xlu1 %428 }
  0xcd   : > { %v521_v0 = vpop.permute.xlu0 %520  ;;  %v554_v15 = vsel %vm550_vm2, %v545_v27, %v429_v63 }
  0xce   : > { %v579_v5 = vsel %vm577_vm5, %v570_v62, %v521_v0 }
  0xcf   : > { %1715 = vmatmul.mubr.msk.f32.vlgmr.msra.gmra.mxu0 %vm599_vm6, %v579_v5 }
  0xd0   : > { %v461_v11 = vpop.permute.xlu1 %460 }
  0xd1   : > { %v459_v12 = vpop.permute.xlu0 %458  ;;  %v563_v28 = vsel %vm559_vm3, %v554_v15, %v461_v11 }
  0xd2   : > { %v562_v18 = vsel %vm559_vm3, %v553_v17, %v459_v12 }
  0xd4   : > { %v399_v14 = vpop.permute.xlu1 %398 }
  0xd5   : > { %v491_v16 = vpop.permute.xlu0 %490  ;;  %v546_v37 = vsel %vm297_vm0, %v2259_v25, %v399_v14 }
  0xd6   : > { %v571_v19 = vsel %vm568_vm4, %v562_v18, %v491_v16 }
  0xd8   : > { %v523_v20 = vpop.permute.xlu1 %522 }
  0xd9   : > { %v493_v21 = vpop.permute.xlu0 %492  ;;  %v580_v22 = vsel %vm577_vm5, %v571_v19, %v523_v20 }
  0xda   : > { %1717 = vmatprep.mubr.msk.f32.mxu0 %vm599_vm6, %v580_v22  ;;  %v572_v29 = vsel %vm568_vm4, %v563_v28, %v493_v21 }
  0xdc   : > { %v431_v23 = vpop.permute.xlu1 %430 }
  0xdd   : > { %v401_v24 = vpop.permute.xlu0 %400  ;;  %v555_v26 = vsel %vm550_vm2, %v546_v37, %v431_v23 }
  0xde   : > { %v547_v47 = vsel %vm297_vm0, %v2277_v32, %v401_v24 }
  0xe0   : > { %v433_v30 = vpop.permute.xlu1 %432 }
  0xe1   : > { %v525_v33 = vpop.permute.xlu0 %524  ;;  %v556_v25 = vsel %vm550_vm2, %v547_v47, %v433_v30 }
  0xe2   : > { %v581_v34 = vsel %vm577_vm5, %v572_v29, %v525_v33 }
  0xe3   : > { %1718 = vmatmul.mubr.msk.f32.gmra.mxu0 %vm599_vm6, %v581_v34 }
  0xe4   : > { %v465_v35 = vpop.permute.xlu1 %464 }
  0xe5   : > { %v463_v36 = vpop.permute.xlu0 %462  ;;  %v565_v50 = vsel %vm559_vm3, %v556_v25, %v465_v35 }
  0xe6   : > { %v564_v41 = vsel %vm559_vm3, %v555_v26, %v463_v36 }
  0xe8   : > { %v403_v39 = vpop.permute.xlu1 %402 }
  0xe9   : > { %v495_v40 = vpop.permute.xlu0 %494  ;;  %v548_v57 = vsel %vm297_vm0, %v2275_v31, %v403_v39 }
  0xea   : > { %v573_v42 = vsel %vm568_vm4, %v564_v41, %v495_v40 }
  0xec   : > { %v527_v43 = vpop.permute.xlu1 %526 }
  0xed   : > { %v497_v44 = vpop.permute.xlu0 %496  ;;  %v582_v46 = vsel %vm577_vm5, %v573_v42, %v527_v43 }
  0xee   : > { %1720 = vmatprep.mubr.msk.f32.mxu0 %vm599_vm6, %v582_v46  ;;  %v574_v51 = vsel %vm568_vm4, %v565_v50, %v497_v44 }
  0xf0   : > { %v435_v48 = vpop.permute.xlu1 %434 }
  0xf1   : > { %v405_v49 = vpop.permute.xlu0 %404  ;;  %v557_v60 = vsel %vm550_vm2, %v548_v57, %v435_v48  ;;  %v1085_v57 = vld [vmem:[%s2712_s3 + $0x20] sm:$0xff] }
  0xf2   : > { %v549_v32 = vsel %vm297_vm0, %v2291_v38, %v405_v49 }
  0xf4   : > { %v437_v52 = vpop.permute.xlu1 %436 }
  0xf5   : > { %v529_v53 = vpop.permute.xlu0 %528  ;;  %v558_v61 = vsel %vm550_vm2, %v549_v32, %v437_v52 }
  0xf6   : > { %v583_v54 = vsel %vm577_vm5, %v574_v51, %v529_v53 }
  0xf7   : > { %1721 = vmatmul.mubr.msk.f32.gmra.mxu0 %vm599_vm6, %v583_v54 }
  0xf8   : > { %v469_v55 = vpop.permute.xlu1 %468 }
  0xf9   : > { %v467_v56 = vpop.permute.xlu0 %466  ;;  %v567_v62 = vsel %vm559_vm3, %v558_v61, %v469_v55 }
  0xfa   : > { %v566_v63 = vsel %vm559_vm3, %v557_v60, %v467_v56  ;;  %v1086_v56 = vld [vmem:[%s2712_s3 + $0x28] sm:$0xff]  ;;  %v1083_v60 = vld [vmem:[%s2712_s3 + $0x10] sm:$0xff] }
  0xfb   : > { %1726 = vmatprep.subr.mxu1 %v1086_v56 }
  0xfc   : > { %v501_v58 = vpop.permute.xlu1 %500  ;;  %1727 = vmatpush3.msra.mxu1 %v1086_v56 }
  0xfd   : > { %v499_v59 = vpop.permute.xlu0 %498  ;;  %v576_v0 = vsel %vm568_vm4, %v567_v62, %v501_v58  ;;  %1728 = vmatprep.subr.mxu1 %v1085_v57 }
  0xfe   : > { %v575_v5 = vsel %vm568_vm4, %v566_v63, %v499_v59  ;;  %v1084_v59 = vld [vmem:[%s2712_s3 + $0x18] sm:$0xff]  ;;  %1729 = vmatpush3.msra.mxu1 %v1085_v57  ;;  %v1082_v63 = vld [vmem:[%s2712_s3 + $0x8] sm:$0xff] }
  0xff   : > { %1730 = vmatprep.subr.mxu1 %v1084_v59 }
 0x100   : > { %v533_v11 = vpop.permute.xlu1 %532  ;;  %1731 = vmatpush3.msra.mxu1 %v1084_v59 }
 0x101   : > { %v531_v12 = vpop.permute.xlu0 %530  ;;  %v585_v31 = vsel %vm577_vm5, %v576_v0, %v533_v11  ;;  %1732 = vmatprep.subr.mxu1 %v1083_v60 }
 0x102   : > { %v584_v38 = vsel %vm577_vm5, %v575_v5, %v531_v12  ;;  %1733 = vmatpush3.msra.mxu1 %v1083_v60 }
 0x103   : > { %1723 = vmatprep.mubr.msk.f32.mxu0 %vm599_vm6, %v584_v38  ;;  %1734 = vmatprep.subr.mxu1 %v1082_v63  ;;  %v1081_v38 = vld [vmem:[%s2712_s3] sm:$0xff] }
 0x104   : > { %1724 = vmatmul.mubr.msk.f32.gmra.mxu0 %vm599_vm6, %v585_v31  ;;  %1735 = vmatpush3.msra.mxu1 %v1082_v63 }
 0x105   : > { %v2373_v42 = vpop.permute.xlu0 %889  ;;  %1736 = vmatprep.subr.mxu1 %v1081_v38 }
 0x106   : > { %1737 = vmatpush3.msra.mxu1 %v1081_v38 }
 0x18f   : > { %v1716_v14 = vpop.f32.mrf.mxu0 }
 0x190   : > { %v696_v16 = vadd.f32 %v1716_v14, %v1631_v13 }
 0x191   : > { %v690_v17 = vpop.f32.mrf.mxu0 }
 0x192   : > { %v691_v18 = vadd.f32 %v1631_v13, %v690_v17  ;;  %787 = vrot.lane.b32.xlu1 %v696_v16, %s2005_s15  ;;  %v1641_v34 = vmul.f32 -1.442695, %v696_v16 }
 0x194   : > { %785 = vrot.lane.b32.xlu0 %v691_v18, %s2005_s15  ;;  %v1640_v35 = vmul.f32 -1.442695, %v691_v18  ;;  %1806 = vpow2.f32 %v1641_v34 }
 0x196   : > { %1808 = vpow2.f32 %v1640_v35 }
 0x1a1   : > { %v1807_v36 = vpop.eup %1806 }
 0x1a2   : > { %v754_v40 = vadd.f32 1.0, %v1807_v36 }
 0x1a3   : > { %v1719_v19 = vpop.f32.mrf.mxu0  ;;  %v1809_v37 = vpop.eup %1808 }
 0x1a4   : > { %v706_v20 = vadd.f32 %v1719_v19, %v1631_v13  ;;  %v753_v41 = vadd.f32 1.0, %v1809_v37 }
 0x1a5   : > { %v700_v21 = vpop.f32.mrf.mxu0 }
 0x1a6   : > { %v701_v22 = vadd.f32 %v1631_v13, %v700_v21  ;;  %791 = vrot.lane.b32.xlu1 %v706_v20, %s2005_s15  ;;  %v1643_v39 = vmul.f32 -1.442695, %v706_v20 }
 0x1a8   : > { %789 = vrot.lane.b32.xlu0 %v701_v22, %s2005_s15  ;;  %v1642_v26 = vmul.f32 -1.442695, %v701_v22  ;;  %1810 = vpow2.f32 %v1643_v39 }
 0x1a9   : > { %1812 = vrcp.f32 %v754_v40 }
 0x1aa   : > { %1814 = vpow2.f32 %v1642_v26 }
 0x1ab   : > { %1816 = vrcp.f32 %v753_v41 }
 0x1b5   : > { %v1811_v43 = vpop.eup %1810 }
 0x1b6   : > { %v1813_v44 = vpop.eup %1812  ;;  %v756_v49 = vadd.f32 1.0, %v1811_v43 }
 0x1b7   : > { %v1722_v23 = vpop.f32.mrf.mxu0 }
 0x1b8   : > { %v716_v24 = vadd.f32 %v1722_v23, %v1631_v13  ;;  %1818 = vrcp.f32 %v756_v49 }
 0x1b9   : > { %v710_v27 = vpop.f32.mrf.mxu0 }
 0x1ba   : > { %v711_v15 = vadd.f32 %v1631_v13, %v710_v27  ;;  %795 = vrot.lane.b32.xlu1 %v716_v24, %s2005_s15  ;;  %v1645_v50 = vmul.f32 -1.442695, %v716_v24 }
 0x1bc   : > { %793 = vrot.lane.b32.xlu0 %v711_v15, %s2005_s15  ;;  %v1644_v54 = vmul.f32 -1.442695, %v711_v15  ;;  %1820 = vpow2.f32 %v1645_v50 }
 0x1c4   : > { %v1725_v28 = vpop.f32.mrf.mxu0 }
 0x1c5   : > { %v726_v29 = vadd.f32 %v1725_v28, %v1631_v13 }
 0x1c6   : > { %v720_v30 = vpop.f32.mrf.mxu0 }
 0x1c7   : > { %v721_v33 = vadd.f32 %v1631_v13, %v720_v30  ;;  %799 = vrot.lane.b32.xlu1 %v726_v29, %s2005_s15  ;;  %v1647_v61 = vmul.f32 -1.442695, %v726_v29 }
 0x1c9   : > { %797 = vrot.lane.b32.xlu0 %v721_v33, %s2005_s15  ;;  %v1646_v0 = vmul.f32 -1.442695, %v721_v33 }
 0x1cd   : > { %921 = vrot.lane.b32.xlu0 %v2184_v4, %s2000_s12  ;;  %v1815_v4 = vpop.eup %1814 }
 0x1ce   : > { %v1817_v48 = vpop.eup %1816  ;;  %v755_v53 = vadd.f32 1.0, %v1815_v4 }
 0x1cf   : > { %v1819_v5 = vpop.eup %1818 }
 0x1d0   : > { %1822 = vrcp.f32 %v755_v53  ;;  %v1821_v11 = vpop.eup %1820 }
 0x1d1   : > { %1824 = vpow2.f32 %v1644_v54  ;;  %v758_v18 = vadd.f32 1.0, %v1821_v11 }
 0x1d2   : > { %1826 = vpow2.f32 %v1647_v61 }
 0x1d3   : > { %1828 = vpow2.f32 %v1646_v0 }
 0x1d4   : > { %1830 = vrcp.f32 %v758_v18 }
 0x1dd   : > { %v1823_v13 = vpop.eup %1822 }
 0x1de   : > { %v1825_v16 = vpop.eup %1824 }
 0x1df   : > { %v757_v22 = vadd.f32 1.0, %v1825_v16  ;;  %v1827_v15 = vpop.eup %1826 }
 0x1e0   : > { %v1829_v28 = vpop.eup %1828  ;;  %v760_v29 = vadd.f32 1.0, %v1827_v15 }
 0x1e1   : > { %1832 = vrcp.f32 %v757_v22  ;;  %v759_v34 = vadd.f32 1.0, %v1829_v28  ;;  %v1831_v35 = vpop.eup %1830  ;;  %v1041_v22 = vsel %vm297_vm0, %v2302_v45, %v2373_v42 }
 0x1e2   : > { %1834 = vrcp.f32 %v760_v29 }
 0x1e3   : > { %1836 = vrcp.f32 %v759_v34 }
 0x1ee   : > { %v1833_v40 = vpop.eup %1832 }
 0x204   : > { %v788_v46 = vpop.permute.xlu1 %787 }
 0x205   : > { %v810_v47 = vmul.f32 %v1813_v44, %v788_v46 }
 0x206   : > { %v786_v25 = vpop.permute.xlu0 %785 }
 0x207   : > { %v818_v51 = vmax.f32 %v810_v47, 0.0  ;;  %v809_v52 = vmul.f32 %v1817_v48, %v786_v25  ;;  %v1835_v48 = vpop.eup %1834 }
 0x208   : > { %v1837_v50 = vpop.eup %1836 }
 0x209   : > { %826 = vst.msk [vmem:[#allocation2 + $0x21] sm:$0xff] %vm297_vm0, %v818_v51  ;;  %v817_v55 = vmax.f32 %v809_v52, 0.0 }
 0x20b   : > { %825 = vst.msk [vmem:[#allocation2 + $0x11] sm:$0xff] %vm297_vm0, %v817_v55 }
 0x210   : > { %v2383_v32 = vld [vmem:[#allocation2 + $0x20] sm:$0xff] }
 0x211   : > { %v866_v58 = vld [vmem:[#allocation2 + $0x21] sm:$0xff]  ;;  %955 = vrot.lane.b32.xlu1 %v2383_v32, %s2002_s21 }
 0x212   : > { %987 = vrot.lane.b32.xlu0 %v866_v58, %s2003_s16  ;;  %v874_v62 = vld [vmem:[#allocation2 + $0x22] sm:$0xff]  ;;  %v2399_v31 = vld [vmem:[#allocation2 + $0x10] sm:$0xff] }
 0x213   : > { %v865_v21 = vld [vmem:[#allocation2 + $0x11] sm:$0xff] }
 0x214   : > { %v850_v24 = vld [vmem:[#allocation2 + $0x12] sm:$0xff] }
 0x215   : > { %893 = vrot.lane.b32.xlu1 %v866_v58, %s2001_s20 }
 0x216   : > { %1019 = vrot.lane.b32.xlu0 %v874_v62, %s2004_s29 }
 0x218   : > { %v792_v12 = vpop.permute.xlu1 %791 }
 0x219   : > { %v812_v14 = vmul.f32 %v1819_v5, %v792_v12  ;;  %925 = vrot.lane.b32.xlu1 %v874_v62, %s2000_s12 }
 0x21a   : > { %953 = vrot.lane.b32.xlu0 %v2399_v31, %s2002_s21  ;;  %v790_v17 = vpop.permute.xlu0 %789 }
 0x21b   : > { %v820_v19 = vmax.f32 %v812_v14, 0.0  ;;  %v811_v20 = vmul.f32 %v1823_v13, %v790_v17 }
 0x21d   : > { %828 = vst.msk [vmem:[#allocation2 + $0x41] sm:$0xff] %vm297_vm0, %v820_v19  ;;  %v819_v23 = vmax.f32 %v811_v20, 0.0  ;;  %891 = vrot.lane.b32.xlu1 %v865_v21, %s2001_s20 }
 0x21e   : > { %985 = vrot.lane.b32.xlu0 %v865_v21, %s2003_s16 }
 0x21f   : > { %827 = vst.msk [vmem:[#allocation2 + $0x31] sm:$0xff] %vm297_vm0, %v819_v23 }
 0x221   : > { %923 = vrot.lane.b32.xlu1 %v850_v24, %s2000_s12 }
 0x224   : > { %v868_v27 = vld [vmem:[#allocation2 + $0x41] sm:$0xff] }
 0x225   : > { %991 = vrot.lane.b32.xlu0 %v868_v27, %s2003_s16  ;;  %1017 = vrot.lane.b32.xlu1 %v850_v24, %s2004_s29  ;;  %v876_v30 = vld [vmem:[#allocation2 + $0x42] sm:$0xff] }
 0x226   : > { %v2414_v33 = vld [vmem:[#allocation2 + $0x40] sm:$0xff]  ;;  %v844_v37 = vld [vmem:[#allocation2 + $0x31] sm:$0xff] }
 0x227   : > { %v2421_v44 = vld [vmem:[#allocation2 + $0x30] sm:$0xff] }
 0x228   : > { %v852_v4 = vld [vmem:[#allocation2 + $0x32] sm:$0xff] }
 0x229   : > { %1023 = vrot.lane.b32.xlu0 %v876_v30, %s2004_s29  ;;  %959 = vrot.lane.b32.xlu1 %v2414_v33, %s2002_s21 }
 0x22c   : > { %v796_v36 = vpop.permute.xlu1 %795 }
 0x22d   : > { %v814_v39 = vmul.f32 %v1831_v35, %v796_v36  ;;  %895 = vrot.lane.b32.xlu0 %v844_v37, %s2001_s20  ;;  %897 = vrot.lane.b32.xlu1 %v868_v27, %s2001_s20 }
 0x22e   : > { %v794_v26 = vpop.permute.xlu0 %793 }
 0x22f   : > { %v822_v41 = vmax.f32 %v814_v39, 0.0  ;;  %v813_v43 = vmul.f32 %v1833_v40, %v794_v26 }
 0x231   : > { %830 = vst.msk [vmem:[#allocation2 + $0x61] sm:$0xff] %vm297_vm0, %v822_v41  ;;  %v821_v46 = vmax.f32 %v813_v43, 0.0  ;;  %957 = vrot.lane.b32.xlu0 %v2421_v44, %s2002_s21  ;;  %929 = vrot.lane.b32.xlu1 %v876_v30, %s2000_s12 }
 0x233   : > { %829 = vst.msk [vmem:[#allocation2 + $0x51] sm:$0xff] %vm297_vm0, %v821_v46 }
 0x235   : > { %989 = vrot.lane.b32.xlu0 %v844_v37, %s2003_s16  ;;  %927 = vrot.lane.b32.xlu1 %v852_v4, %s2000_s12 }
 0x238   : > { %v870_v47 = vld [vmem:[#allocation2 + $0x61] sm:$0xff] }
 0x239   : > { %v800_v49 = vpop.permute.xlu1 %799  ;;  %995 = vrot.lane.b32.xlu0 %v870_v47, %s2003_s16  ;;  %1021 = vrot.lane.b32.xlu1 %v852_v4, %s2004_s29  ;;  %v878_v54 = vld [vmem:[#allocation2 + $0x62] sm:$0xff] }
 0x23a   : > { %v816_v25 = vmul.f32 %v1835_v48, %v800_v49  ;;  %v2432_v55 = vld [vmem:[#allocation2 + $0x60] sm:$0xff]  ;;  %v846_v57 = vld [vmem:[#allocation2 + $0x51] sm:$0xff] }
 0x23b   : > { %v798_v51 = vpop.permute.xlu0 %797  ;;  %v2441_v58 = vld [vmem:[#allocation2 + $0x50] sm:$0xff] }
 0x23c   : > { %v824_v52 = vmax.f32 %v816_v25, 0.0  ;;  %v815_v53 = vmul.f32 %v1837_v50, %v798_v51  ;;  %v854_v59 = vld [vmem:[#allocation2 + $0x52] sm:$0xff] }
 0x23d   : > { %1027 = vrot.lane.b32.xlu0 %v878_v54, %s2004_s29  ;;  %963 = vrot.lane.b32.xlu1 %v2432_v55, %s2002_s21 }
 0x23e   : > { %832 = vst.msk [vmem:[#allocation2 + $0x81] sm:$0xff] %vm297_vm0, %v824_v52  ;;  %v823_v56 = vmax.f32 %v815_v53, 0.0 }
 0x23f   : > { %v922_v11 = vpop.permute.xlu0 %921 }
 0x240   : > { %831 = vst.msk [vmem:[#allocation2 + $0x71] sm:$0xff] %vm297_vm0, %v823_v56  ;;  %v1049_v24 = vsel %vm550_vm2, %v1041_v22, %v922_v11 }
 0x241   : > { %899 = vrot.lane.b32.xlu0 %v846_v57, %s2001_s20  ;;  %901 = vrot.lane.b32.xlu1 %v870_v47, %s2001_s20 }
 0x245   : > { %961 = vrot.lane.b32.xlu0 %v2441_v58, %s2002_s21  ;;  %933 = vrot.lane.b32.xlu1 %v878_v54, %s2000_s12  ;;  %v864_v62 = vld [vmem:[#allocation2 + $0x80] sm:$0xff] }
 0x246   : > { %v872_v63 = vld [vmem:[#allocation2 + $0x81] sm:$0xff] }
 0x247   : > { %v848_v60 = vld [vmem:[#allocation2 + $0x71] sm:$0xff]  ;;  %v880_v5 = vld [vmem:[#allocation2 + $0x82] sm:$0xff] }
 0x248   : > { %v2450_v61 = vld [vmem:[#allocation2 + $0x70] sm:$0xff] }
 0x249   : > { %993 = vrot.lane.b32.xlu0 %v846_v57, %s2003_s16  ;;  %931 = vrot.lane.b32.xlu1 %v854_v59, %s2000_s12  ;;  %v879_v0 = vld [vmem:[#allocation2 + $0x72] sm:$0xff] }
 0x24d   : > { %903 = vrot.lane.b32.xlu0 %v848_v60, %s2001_s20  ;;  %1025 = vrot.lane.b32.xlu1 %v854_v59, %s2004_s29 }
 0x251   : > { %965 = vrot.lane.b32.xlu0 %v2450_v61, %s2002_s21  ;;  %967 = vrot.lane.b32.xlu1 %v864_v62, %s2002_s21  ;;  %s2006_s21 = smov [#allocation6]  }
 0x255   : > { %997 = vrot.lane.b32.xlu0 %v848_v60, %s2003_s16  ;;  %999 = vrot.lane.b32.xlu1 %v872_v63, %s2003_s16  ;;  %s1934_s16 = sshll.u32 %s2006_s21, 4  ;;  %s1935_s16 = int_to_ptr.vmem [resolvable:$false] %s1934_s16 }
 0x256   : > { %p1937_p5 = scmp.lt.s32.totalorder %s2663_s19, %s1935_s16 }
 0x259   : > { %1029 = vrot.lane.b32.xlu0 %v879_v0, %s2004_s29  ;;  %935 = vrot.lane.b32.xlu1 %v879_v0, %s2000_s12  ;;  %s1930_s12 = scalar_lea.vmem %s2663_s19, 1024 }
 0x25a   : > { %p1931_p11 = scmp.ne.s32.totalorder %s2663_s19, %s1930_s12 }
 0x25c   : > { %p1932_p13 = pnand %p1931_p11, %p2725_p12 }
 0x25d   : > { %1031 = vrot.lane.b32.xlu1 %v880_v5, %s2004_s29  ;;  %s1936_s29 = scalar_lea.vmem %s1935_s16, 2048 }
 0x25e   : > { %p1933_p4 = pneg %p1932_p13  ;;  %p1938_p7 = scmp.lt.s32.totalorder %s1936_s29, %s1930_s12 }
 0x260   : > { %p1939_p8 = por %p1938_p7, %p1937_p5 }
 0x262   : > { %p1940_p10 = pnand %p1939_p8, %p1933_p4 }
 0x283   : > { %v956_v12 = vpop.permute.xlu1 %955 }
 0x284   : > { %v988_v38 = vpop.permute.xlu0 %987 }
 0x287   : > { %v894_v13 = vpop.permute.xlu1 %893 }
 0x288   : > { %v1020_v14 = vpop.permute.xlu0 %1019  ;;  %v1043_v46 = vsel %vm297_vm0, %v2383_v32, %v894_v13 }
 0x28b   : > { %v926_v16 = vpop.permute.xlu1 %925 }
 0x28c   : > { %v954_v17 = vpop.permute.xlu0 %953  ;;  %v1051_v47 = vsel %vm550_vm2, %v1043_v46, %v926_v16 }
 0x28d   : > { %v1057_v15 = vsel %vm559_vm3, %v1049_v24, %v954_v17 }
 0x28f   : > { %v892_v18 = vpop.permute.xlu1 %891 }
 0x290   : > { %v986_v19 = vpop.permute.xlu0 %985  ;;  %v1042_v20 = vsel %vm297_vm0, %v2399_v31, %v892_v18 }
 0x291   : > { %v1065_v29 = vsel %vm568_vm4, %v1057_v15, %v986_v19 }
 0x293   : > { %v924_v21 = vpop.permute.xlu1 %923 }
 0x294   : > { %v1050_v23 = vsel %vm550_vm2, %v1042_v20, %v924_v21 }
 0x295   : > { %v1058_v27 = vsel %vm559_vm3, %v1050_v23, %v956_v12 }
 0x296   : > { %v1066_v28 = vsel %vm568_vm4, %v1058_v27, %v988_v38 }
 0x297   : > { %v992_v30 = vpop.permute.xlu0 %991  ;;  %v1018_v34 = vpop.permute.xlu1 %1017  ;;  %v1074_v45 = vsel %vm577_vm5, %v1066_v28, %v1020_v14 }
 0x298   : > { %v1073_v31 = vsel %vm577_vm5, %v1065_v29, %v1018_v34 }
 0x299   : > { %1738 = vmatprep.mubr.msk.f32.mxu1 %vm599_vm6, %v1073_v31 }
 0x29a   : > { %1739 = vmatmul.mubr.msk.f32.vlgmr.msra.gmra.mxu1 %vm599_vm6, %v1074_v45 }
 0x29b   : > { %v1024_v42 = vpop.permute.xlu0 %1023  ;;  %v960_v35 = vpop.permute.xlu1 %959 }
 0x29f   : > { %v896_v36 = vpop.permute.xlu0 %895  ;;  %v898_v37 = vpop.permute.xlu1 %897 }
 0x2a0   : > { %v1044_v26 = vsel %vm297_vm0, %v2421_v44, %v896_v36  ;;  %v1045_v5 = vsel %vm297_vm0, %v2414_v33, %v898_v37 }
 0x2a3   : > { %v958_v39 = vpop.permute.xlu0 %957  ;;  %v930_v40 = vpop.permute.xlu1 %929 }
 0x2a4   : > { %v1059_v49 = vsel %vm559_vm3, %v1051_v47, %v958_v39  ;;  %v1053_v12 = vsel %vm550_vm2, %v1045_v5, %v930_v40 }
 0x2a7   : > { %v990_v41 = vpop.permute.xlu0 %989  ;;  %v928_v43 = vpop.permute.xlu1 %927 }
 0x2a8   : > { %v1052_v4 = vsel %vm550_vm2, %v1044_v26, %v928_v43  ;;  %v1067_v50 = vsel %vm568_vm4, %v1059_v49, %v990_v41 }
 0x2a9   : > { %v1060_v48 = vsel %vm559_vm3, %v1052_v4, %v960_v35 }
 0x2aa   : > { %v1068_v25 = vsel %vm568_vm4, %v1060_v48, %v992_v30 }
 0x2ab   : > { %v996_v51 = vpop.permute.xlu0 %995  ;;  %v1022_v52 = vpop.permute.xlu1 %1021  ;;  %v1076_v32 = vsel %vm577_vm5, %v1068_v25, %v1024_v42 }
 0x2ac   : > { %v1075_v44 = vsel %vm577_vm5, %v1067_v50, %v1022_v52 }
 0x2ad   : > { %1741 = vmatprep.mubr.msk.f32.mxu1 %vm599_vm6, %v1075_v44 }
 0x2ae   : > { %1742 = vmatmul.mubr.msk.f32.gmra.mxu1 %vm599_vm6, %v1076_v32 }
 0x2af   : > { %v1028_v53 = vpop.permute.xlu0 %1027  ;;  %v964_v54 = vpop.permute.xlu1 %963 }
 0x2b3   : > { %v900_v56 = vpop.permute.xlu0 %899  ;;  %v902_v57 = vpop.permute.xlu1 %901 }
 0x2b4   : > { %v1046_v62 = vsel %vm297_vm0, %v2441_v58, %v900_v56  ;;  %v1047_v23 = vsel %vm297_vm0, %v2432_v55, %v902_v57 }
 0x2b7   : > { %v962_v59 = vpop.permute.xlu0 %961  ;;  %v934_v60 = vpop.permute.xlu1 %933 }
 0x2b8   : > { %v1061_v13 = vsel %vm559_vm3, %v1053_v12, %v962_v59  ;;  %v1055_v24 = vsel %vm550_vm2, %v1047_v23, %v934_v60 }
 0x2bb   : > { %v994_v63 = vpop.permute.xlu0 %993  ;;  %v932_v0 = vpop.permute.xlu1 %931 }
 0x2bc   : > { %v1054_v11 = vsel %vm550_vm2, %v1046_v62, %v932_v0  ;;  %v1069_v16 = vsel %vm568_vm4, %v1061_v13, %v994_v63 }
 0x2bd   : > { %v1062_v38 = vsel %vm559_vm3, %v1054_v11, %v964_v54 }
 0x2be   : > { %v1070_v14 = vsel %vm568_vm4, %v1062_v38, %v996_v51 }
 0x2bf   : > { %v904_v17 = vpop.permute.xlu0 %903  ;;  %v1026_v18 = vpop.permute.xlu1 %1025  ;;  %v1078_v33 = vsel %vm577_vm5, %v1070_v14, %v1028_v53 }
 0x2c0   : > { %v1077_v58 = vsel %vm577_vm5, %v1069_v16, %v1026_v18  ;;  %v1048_v15 = vsel %vm297_vm0, %v2450_v61, %v904_v17  ;;  %v1648_v61 = vld [vmem:[%s2713_s4] ss:$0 sm:$0xff] }
 0x2c1   : > { %1744 = vmatprep.mubr.msk.f32.mxu1 %vm599_vm6, %v1077_v58 }
 0x2c2   : > { %1745 = vmatmul.mubr.msk.f32.gmra.mxu1 %vm599_vm6, %v1078_v33 }
 0x2c3   : > { %v966_v19 = vpop.permute.xlu0 %965  ;;  %v968_v20 = vpop.permute.xlu1 %967 }
 0x2c4   : > { %v1063_v27 = vsel %vm559_vm3, %v1055_v24, %v966_v19 }
 0x2c7   : > { %v998_v21 = vpop.permute.xlu0 %997  ;;  %v1000_v22 = vpop.permute.xlu1 %999 }
 0x2c8   : > { %v1071_v28 = vsel %vm568_vm4, %v1063_v27, %v998_v21 }
 0x2cb   : > { %v1030_v29 = vpop.permute.xlu0 %1029  ;;  %v936_v30 = vpop.permute.xlu1 %935 }
 0x2cc   : > { %v1079_v34 = vsel %vm577_vm5, %v1071_v28, %v1030_v29  ;;  %v1056_v31 = vsel %vm550_vm2, %v1048_v15, %v936_v30 }
 0x2cd   : > { %v1064_v45 = vsel %vm559_vm3, %v1056_v31, %v968_v20  ;;  %1747 = vmatprep.mubr.msk.f32.mxu1 %vm599_vm6, %v1079_v34 }
 0x2ce   : > { %v1072_v55 = vsel %vm568_vm4, %v1064_v45, %v1000_v22 }
 0x2cf   : > { %v1032_v42 = vpop.permute.xlu1 %1031 }
 0x2d0   : > { %v1080_v35 = vsel %vm577_vm5, %v1072_v55, %v1032_v42 }
 0x2d1   : > { %1748 = vmatmul.mubr.msk.f32.gmra.mxu1 %vm599_vm6, %v1080_v35 }
 0x35a   : > { %v1740_v36 = vpop.f32.mrf.mxu1 }
 0x35b   : > { %v1190_v37 = vadd.f32 %v1740_v36, %v1648_v61 }
 0x35c   : > { %v1184_v39 = vpop.f32.mrf.mxu1 }
 0x35d   : > { %v1185_v40 = vadd.f32 %v1648_v61, %v1184_v39  ;;  %1281 = vrot.lane.b32.xlu1 %v1190_v37, %s2005_s15  ;;  %v1658_v44 = vmul.f32 -1.442695, %v1190_v37 }
 0x35f   : > { %1279 = vrot.lane.b32.xlu0 %v1185_v40, %s2005_s15  ;;  %v1657_v32 = vmul.f32 -1.442695, %v1185_v40  ;;  %1838 = vpow2.f32 %v1658_v44 }
 0x361   : > { %1840 = vpow2.f32 %v1657_v32 }
 0x36c   : > { %v1839_v53 = vpop.eup %1838 }
 0x36d   : > { %v1248_v57 = vadd.f32 1.0, %v1839_v53 }
 0x36e   : > { %v1743_v26 = vpop.f32.mrf.mxu1  ;;  %v1841_v54 = vpop.eup %1840 }
 0x36f   : > { %v1200_v41 = vadd.f32 %v1743_v26, %v1648_v61  ;;  %v1247_v60 = vadd.f32 1.0, %v1841_v54 }
 0x370   : > { %v1194_v43 = vpop.f32.mrf.mxu1 }
 0x371   : > { %v1195_v46 = vadd.f32 %v1648_v61, %v1194_v43  ;;  %1285 = vrot.lane.b32.xlu1 %v1200_v41, %s2005_s15  ;;  %v1660_v56 = vmul.f32 -1.442695, %v1200_v41 }
 0x373   : > { %1283 = vrot.lane.b32.xlu0 %v1195_v46, %s2005_s15  ;;  %v1659_v59 = vmul.f32 -1.442695, %v1195_v46  ;;  %1842 = vpow2.f32 %v1660_v56 }
 0x374   : > { %1844 = vrcp.f32 %v1248_v57 }
 0x375   : > { %1846 = vpow2.f32 %v1659_v59 }
 0x376   : > { %1848 = vrcp.f32 %v1247_v60 }
 0x380   : > { %v1843_v62 = vpop.eup %1842 }
 0x381   : > { %v1845_v63 = vpop.eup %1844  ;;  %v1250_v38 = vadd.f32 1.0, %v1843_v62 }
 0x382   : > { %v1746_v4 = vpop.f32.mrf.mxu1  ;;  %v1847_v5 = vpop.eup %1846 }
 0x383   : > { %v1210_v47 = vadd.f32 %v1746_v4, %v1648_v61  ;;  %v1849_v12 = vpop.eup %1848  ;;  %v1249_v18 = vadd.f32 1.0, %v1847_v5  ;;  %1850 = vrcp.f32 %v1250_v38 }
 0x384   : > { %v1204_v48 = vpop.f32.mrf.mxu1 }
 0x385   : > { %v1205_v49 = vadd.f32 %v1648_v61, %v1204_v48  ;;  %1289 = vrot.lane.b32.xlu1 %v1210_v47, %s2005_s15  ;;  %v1662_v14 = vmul.f32 -1.442695, %v1210_v47 }
 0x387   : > { %1287 = vrot.lane.b32.xlu0 %v1205_v49, %s2005_s15  ;;  %v1661_v58 = vmul.f32 -1.442695, %v1205_v49  ;;  %1852 = vpow2.f32 %v1662_v14 }
 0x388   : > { %1854 = vrcp.f32 %v1249_v18 }
 0x389   : > { %1856 = vpow2.f32 %v1661_v58 }
 0x390   : > { %v1851_v27 = vpop.eup %1850 }
 0x391   : > { %v1749_v25 = vpop.f32.mrf.mxu1 }
 0x392   : > { %v1220_v50 = vadd.f32 %v1749_v25, %v1648_v61 }
 0x393   : > { %v1214_v51 = vpop.f32.mrf.mxu1 }
 0x394   : > { %v1215_v52 = vadd.f32 %v1648_v61, %v1214_v51  ;;  %1293 = vrot.lane.b32.xlu1 %v1220_v50, %s2005_s15  ;;  %v1664_v24 = vmul.f32 -1.442695, %v1220_v50  ;;  %v1853_v15 = vpop.eup %1852 }
 0x395   : > { %v1855_v29 = vpop.eup %1854  ;;  %v1252_v45 = vadd.f32 1.0, %v1853_v15 }
 0x396   : > { %1291 = vrot.lane.b32.xlu0 %v1215_v52, %s2005_s15  ;;  %v1663_v28 = vmul.f32 -1.442695, %v1215_v52  ;;  %v1857_v34 = vpop.eup %1856  ;;  %1858 = vpow2.f32 %v1664_v24 }
 0x397   : > { %v1251_v35 = vadd.f32 1.0, %v1857_v34 }
 0x398   : > { %1860 = vpow2.f32 %v1663_v28 }
 0x399   : > { %1862 = vrcp.f32 %v1252_v45 }
 0x39a   : > { %1864 = vrcp.f32 %v1251_v35 }
 0x3a3   : > { %v1859_v43 = vpop.eup %1858 }
 0x3a5   : > { %v1861_v46 = vpop.eup %1860 }
 0x3a6   : > { %v1863_v4 = vpop.eup %1862  ;;  %v1253_v47 = vadd.f32 1.0, %v1861_v46 }
 0x3a7   : > { %v1865_v25 = vpop.eup %1864 }
 0x3cf   : > { %v1282_v0 = vpop.permute.xlu1 %1281 }
 0x3d0   : > { %v1304_v11 = vmul.f32 %v1845_v63, %v1282_v0 }
 0x3d1   : > { %v1280_v13 = vpop.permute.xlu0 %1279 }
 0x3d2   : > { %v1312_v16 = vmax.f32 %v1304_v11, 0.0  ;;  %v1303_v17 = vmul.f32 %v1849_v12, %v1280_v13 }
 0x3d4   : > { %v1311_v33 = vmax.f32 %v1303_v17, 0.0  ;;  %v2529_v19 = vadd.f32 %v1312_v16, %v2179_v2 }
 0x3d6   : > { %v1328_v20 = vmax.f32 %v2529_v19, 0.0  ;;  %v2533_v21 = vadd.f32 %v1311_v33, %v2176_v1 }
 0x3d8   : > { %v1338_v22 = vsel %vm297_vm0, %v1328_v20, 0.0  ;;  %v1327_v23 = vmax.f32 %v2533_v21, 0.0 }
 0x3d9   : > { %1339 = vadd.xlane.f32.xlu1 %v1338_v22 }
 0x3da   : > { %v1335_v2 = vsel %vm297_vm0, %v1327_v23, 0.0 }
 0x3db   : > { %1336 = vadd.xlane.f32.xlu0 %v1335_v2 }
 0x3e3   : > { %v1286_v1 = vpop.permute.xlu1 %1285 }
 0x3e4   : > { %v1306_v30 = vmul.f32 %v1851_v27, %v1286_v1 }
 0x3e5   : > { %v1284_v31 = vpop.permute.xlu0 %1283 }
 0x3e6   : > { %v1314_v55 = vmax.f32 %v1306_v30, 0.0  ;;  %v1305_v42 = vmul.f32 %v1855_v29, %v1284_v31 }
 0x3e8   : > { %v2543_v61 = vadd.f32 %v1314_v55, %v2195_v6  ;;  %v1313_v36 = vmax.f32 %v1305_v42, 0.0  ;;  %v1254_v6 = vadd.f32 1.0, %v1859_v43 }
 0x3ea   : > { %v1330_v37 = vmax.f32 %v2543_v61, 0.0  ;;  %v2547_v39 = vadd.f32 %v1313_v36, %v2182_v3  ;;  %1866 = vrcp.f32 %v1254_v6 }
 0x3eb   : > { %1868 = vrcp.f32 %v1253_v47 }
 0x3ec   : > { %v1329_v40 = vmax.f32 %v2547_v39, 0.0  ;;  %v1344_v26 = vsel %vm297_vm0, %v1330_v37, 0.0 }
 0x3ed   : > { %1345 = vadd.xlane.f32.xlu0 %v1344_v26 }
 0x3ee   : > { %v1341_v41 = vsel %vm297_vm0, %v1329_v40, 0.0 }
 0x3f1   : > { %1342 = vadd.xlane.f32.xlu0 %v1341_v41 }
 0x3f7   : > { %v1290_v48 = vpop.permute.xlu1 %1289  ;;  %v1867_v59 = vpop.eup %1866 }
 0x3f8   : > { %v1308_v49 = vmul.f32 %v1863_v4, %v1290_v48  ;;  %v1869_v63 = vpop.eup %1868 }
 0x3f9   : > { %v1288_v3 = vpop.permute.xlu0 %1287 }
 0x3fa   : > { %v1316_v50 = vmax.f32 %v1308_v49, 0.0  ;;  %v1307_v51 = vmul.f32 %v1865_v25, %v1288_v3 }
 0x3fc   : > { %v1324_v52 = vadd.f32 %v1316_v50, %v2207_v8  ;;  %v1315_v44 = vmax.f32 %v1307_v51, 0.0 }
 0x3fe   : > { %v1332_v32 = vmax.f32 %v1324_v52, 0.0  ;;  %v1323_v53 = vadd.f32 %v1315_v44, %v2204_v7 }
 0x400   : > { %v1331_v54 = vmax.f32 %v1323_v53, 0.0  ;;  %v1350_v56 = vsel %vm297_vm0, %v1332_v32, 0.0 }
 0x401   : > { %1351 = vadd.xlane.f32.xlu0 %v1350_v56 }
 0x402   : > { %v1347_v57 = vsel %vm297_vm0, %v1331_v54, 0.0 }
 0x403   : > { %1348 = vadd.xlane.f32.xlu1 %v1347_v57 }
 0x406   : > { %v1294_v60 = vpop.permute.xlu1 %1293 }
 0x407   : > { %v1310_v62 = vmul.f32 %v1867_v59, %v1294_v60 }
 0x408   : > { %v1292_v0 = vpop.permute.xlu0 %1291 }
 0x409   : > { %v1318_v5 = vmax.f32 %v1310_v62, 0.0  ;;  %v1309_v11 = vmul.f32 %v1869_v63, %v1292_v0 }
 0x40b   : > { %v1326_v8 = vadd.f32 %v1318_v5, %v2217_v10  ;;  %v1317_v12 = vmax.f32 %v1309_v11, 0.0 }
 0x40d   : > { %v1334_v38 = vmax.f32 %v1326_v8, 0.0  ;;  %v1325_v7 = vadd.f32 %v1317_v12, %v2214_v9 }
 0x40f   : > { %v1333_v13 = vmax.f32 %v1325_v7, 0.0  ;;  %v1356_v14 = vsel %vm297_vm0, %v1334_v38, 0.0 }
 0x410   : > { %1357 = vadd.xlane.f32.xlu0 %v1356_v14 }
 0x411   : > { %v1353_v16 = vsel %vm297_vm0, %v1333_v13, 0.0 }
 0x412   : > { %1354 = vadd.xlane.f32.xlu1 %v1353_v16 }
 0x462   : > { %v1340_v17 = vpop.xlane.xlu1 %1339 }
 0x463   : > { %v1361_v18 = vmul.f32 0.125, %v1340_v17  ;;  %v2613_v17 = vld [vmem:[%s2715_s6] ss:$0 sm:$0xff] }
 0x464   : > { %v1337_v58 = vpop.xlane.xlu0 %1336 }
 0x465   : > { %v2562_v33 = vsub.f32 %v1328_v20, %v1361_v18  ;;  %v1360_v22 = vmul.f32 0.125, %v1337_v58 }
 0x467   : > { %v2566_v10 = vsub.f32 %v1327_v23, %v1360_v22  ;;  %v1377_v9 = vmul.f32 %v2562_v33, %v2562_v33 }
 0x469   : > { %v1387_v2 = vsel %vm297_vm0, %v1377_v9, 0.0  ;;  %v1376_v24 = vmul.f32 %v2566_v10, %v2566_v10 }
 0x46a   : > { %1388 = vadd.xlane.f32.xlu0 %v1387_v2 }
 0x46b   : > { %v1384_v27 = vsel %vm297_vm0, %v1376_v24, 0.0 }
 0x46c   : > { %1385 = vadd.xlane.f32.xlu1 %v1384_v27 }
 0x476   : > { %v1346_v19 = vpop.xlane.xlu0 %1345 }
 0x477   : > { %v1363_v20 = vmul.f32 0.125, %v1346_v19 }
 0x479   : > { %v2574_v15 = vsub.f32 %v1330_v37, %v1363_v20 }
 0x47a   : > { %v1343_v28 = vpop.xlane.xlu0 %1342 }
 0x47b   : > { %v1362_v21 = vmul.f32 0.125, %v1343_v28  ;;  %v1379_v23 = vmul.f32 %v2574_v15, %v2574_v15 }
 0x47d   : > { %v2578_v1 = vsub.f32 %v1329_v40, %v1362_v21  ;;  %v1393_v29 = vsel %vm297_vm0, %v1379_v23, 0.0 }
 0x47e   : > { %1394 = vadd.xlane.f32.xlu0 %v1393_v29 }
 0x47f   : > { %v1378_v30 = vmul.f32 %v2578_v1, %v2578_v1 }
 0x481   : > { %v1390_v34 = vsel %vm297_vm0, %v1378_v30, 0.0 }
 0x482   : > { %1391 = vadd.xlane.f32.xlu1 %v1390_v34 }
 0x48a   : > { %v1352_v31 = vpop.xlane.xlu0 %1351 }
 0x48b   : > { %v1365_v45 = vmul.f32 0.125, %v1352_v31 }
 0x48c   : > { %v1349_v55 = vpop.xlane.xlu1 %1348 }
 0x48d   : > { %v2584_v42 = vsub.f32 %v1332_v32, %v1365_v45  ;;  %v1364_v35 = vmul.f32 0.125, %v1349_v55 }
 0x48f   : > { %v2586_v61 = vsub.f32 %v1331_v54, %v1364_v35  ;;  %v1381_v36 = vmul.f32 %v2584_v42, %v2584_v42 }
 0x491   : > { %v1399_v37 = vsel %vm297_vm0, %v1381_v36, 0.0  ;;  %v1380_v39 = vmul.f32 %v2586_v61, %v2586_v61 }
 0x492   : > { %1400 = vadd.xlane.f32.xlu0 %v1399_v37 }
 0x493   : > { %v1396_v40 = vsel %vm297_vm0, %v1380_v39, 0.0 }
 0x494   : > { %1397 = vadd.xlane.f32.xlu1 %v1396_v40 }
 0x499   : > { %v1358_v26 = vpop.xlane.xlu0 %1357 }
 0x49a   : > { %v1367_v41 = vmul.f32 0.125, %v1358_v26 }
 0x49b   : > { %v1355_v43 = vpop.xlane.xlu1 %1354 }
 0x49c   : > { %v2594_v46 = vsub.f32 %v1334_v38, %v1367_v41  ;;  %v1366_v6 = vmul.f32 0.125, %v1355_v43 }
 0x49e   : > { %v2596_v4 = vsub.f32 %v1333_v13, %v1366_v6  ;;  %v1383_v47 = vmul.f32 %v2594_v46, %v2594_v46  ;;  %v2607_v13 = vld [vmem:[%s2714_s5] ss:$0 sm:$0xff] }
 0x4a0   : > { %v1405_v48 = vsel %vm297_vm0, %v1383_v47, 0.0  ;;  %v1382_v49 = vmul.f32 %v2596_v4, %v2596_v4 }
 0x4a1   : > { %1406 = vadd.xlane.f32.xlu0 %v1405_v48 }
 0x4a2   : > { %v1402_v25 = vsel %vm297_vm0, %v1382_v49, 0.0 }
 0x4a3   : > { %1403 = vadd.xlane.f32.xlu1 %v1402_v25 }
 0x4f3   : > { %v1389_v3 = vpop.xlane.xlu0 %1388 }
 0x4f4   : > { %v1410_v50 = vmul.f32 0.14285715, %v1389_v3 }
 0x4f5   : > { %v1386_v51 = vpop.xlane.xlu1 %1385 }
 0x4f6   : > { %1870 = vrsqrt.f32 %v1410_v50  ;;  %v1409_v52 = vmul.f32 0.14285715, %v1386_v51  ;;  %vm1426_vm7 = vcmp.eq.f32.partialorder %v1410_v50, inf  ;;  %v1429_v53 = vand.u32 2147483648, %v1410_v50 }
 0x4f7   : > { %vm1428_vm8 = vcmp.eq.f32.partialorder %v1410_v50, 0.0 }
 0x4f8   : > { %1872 = vrsqrt.f32 %v1409_v52  ;;  %vm1419_vm9 = vcmp.eq.f32.partialorder %v1409_v52, inf  ;;  %v1422_v63 = vand.u32 2147483648, %v1409_v52  ;;  %vm1421_vm10 = vcmp.eq.f32.partialorder %v1409_v52, 0.0 }
 0x503   : > { %v1871_v44 = vpop.eup %1870 }
 0x504   : > { %v1425_v32 = vmul.f32 %v1871_v44, %v1410_v50 }
 0x505   : > { %v1873_v54 = vpop.eup %1872 }
 0x506   : > { %v1427_v56 = vsel %vm1426_vm7, %v1410_v50, %v1425_v32  ;;  %v1418_v59 = vmul.f32 %v1873_v54, %v1409_v52 }
 0x507   : > { %v1430_v57 = vsel %vm1428_vm8, %v1429_v53, %v1427_v56  ;;  %v1395_v60 = vpop.xlane.xlu0 %1394 }
 0x508   : > { %v1474_v62 = vadd.f32 0.001, %v1430_v57  ;;  %v1412_v0 = vmul.f32 0.14285715, %v1395_v60  ;;  %v1420_v5 = vsel %vm1419_vm9, %v1409_v52, %v1418_v59 }
 0x509   : > { %v1423_v11 = vsel %vm1421_vm10, %v1422_v63, %v1420_v5 }
 0x50a   : > { %1874 = vrcp.f32 %v1474_v62  ;;  %v1473_v8 = vadd.f32 0.001, %v1423_v11  ;;  %vm1440_vm11 = vcmp.eq.f32.partialorder %v1412_v0, inf  ;;  %v1443_v9 = vand.u32 2147483648, %v1412_v0 }
 0x50b   : > { %1876 = vrsqrt.f32 %v1412_v0  ;;  %v1392_v12 = vpop.xlane.xlu1 %1391  ;;  %vm1442_vm12 = vcmp.eq.f32.partialorder %v1412_v0, 0.0 }
 0x50c   : > { %v1411_v38 = vmul.f32 0.14285715, %v1392_v12  ;;  %1878 = vrcp.f32 %v1473_v8 }
 0x50e   : > { %1880 = vrsqrt.f32 %v1411_v38  ;;  %vm1433_vm13 = vcmp.eq.f32.partialorder %v1411_v38, inf  ;;  %v1436_v30 = vand.u32 2147483648, %v1411_v38  ;;  %vm1435_vm14 = vcmp.eq.f32.partialorder %v1411_v38, 0.0 }
 0x517   : > { %v1875_v7 = vpop.eup %1874 }
 0x518   : > { %v1877_v14 = vpop.eup %1876  ;;  %v1490_v16 = vmul.f32 %v1875_v7, %v2562_v33 }
 0x519   : > { %v1439_v18 = vmul.f32 %v1877_v14, %v1412_v0  ;;  %v1879_v58 = vpop.eup %1878 }
 0x51a   : > { %v1505_v22 = vmul.f32 %v2607_v13, %v1490_v16  ;;  %v1489_v24 = vmul.f32 %v1879_v58, %v2566_v10 }
 0x51b   : > { %v1881_v2 = vpop.eup %1880  ;;  %v1441_v27 = vsel %vm1440_vm11, %v1412_v0, %v1439_v18  ;;  %v1401_v19 = vpop.xlane.xlu0 %1400 }
 0x51c   : > { %v1520_v33 = vadd.f32 %v2613_v17, %v1505_v22  ;;  %v1444_v20 = vsel %vm1442_vm12, %v1443_v9, %v1441_v27  ;;  %v1432_v28 = vmul.f32 %v1881_v2, %v1411_v38  ;;  %v1414_v21 = vmul.f32 0.14285715, %v1401_v19 }
 0x51d   : > { %v1504_v23 = vmul.f32 %v2607_v13, %v1489_v24  ;;  %v1476_v29 = vadd.f32 0.001, %v1444_v20  ;;  %v1398_v34 = vpop.xlane.xlu1 %1397 }
 0x51e   : > { %1528 = vst.msk [vmem:[%s2621_s23 + $0x8] sm:$0xff] %vm297_vm0, %v1520_v33  ;;  %v1434_v10 = vsel %vm1433_vm13, %v1411_v38, %v1432_v28  ;;  %1882 = vrsqrt.f32 %v1414_v21  ;;  %v1413_v35 = vmul.f32 0.14285715, %v1398_v34  ;;  %vm1454_vm15 = vcmp.eq.f32.partialorder %v1414_v21, inf }
 0x51f   : > { %v1519_v31 = vadd.f32 %v2613_v17, %v1504_v23  ;;  %1884 = vrcp.f32 %v1476_v29  ;;  %v1437_v45 = vsel %vm1435_vm14, %v1436_v30, %v1434_v10  ;;  %v1457_v6 = vand.u32 2147483648, %v1414_v21 }
 0x520   : > { %v1475_v55 = vadd.f32 0.001, %v1437_v45  ;;  %vm1456_vm1 = vcmp.eq.f32.partialorder %v1414_v21, 0.0  ;;  %vm1447_vm2 = vcmp.eq.f32.partialorder %v1413_v35, inf  ;;  %v1450_v53 = vand.u32 2147483648, %v1413_v35 }
 0x521   : > { %1527 = vst.msk [vmem:[%s2621_s23] sm:$0xff] %vm297_vm0, %v1519_v31  ;;  %vm1449_vm3 = vcmp.eq.f32.partialorder %v1413_v35, 0.0 }
 0x522   : > { %1886 = vrcp.f32 %v1475_v55 }
 0x523   : > { %1888 = vrsqrt.f32 %v1413_v35 }
 0x52a   : > { %v1407_v36 = vpop.xlane.xlu0 %1406 }
 0x52b   : > { %v1883_v37 = vpop.eup %1882  ;;  %v1416_v39 = vmul.f32 0.14285715, %v1407_v36 }
 0x52c   : > { %v1885_v40 = vpop.eup %1884  ;;  %v1453_v26 = vmul.f32 %v1883_v37, %v1414_v21  ;;  %v1404_v41 = vpop.xlane.xlu1 %1403 }
 0x52d   : > { %v1492_v43 = vmul.f32 %v1885_v40, %v2574_v15  ;;  %1890 = vrsqrt.f32 %v1416_v39  ;;  %v1415_v48 = vmul.f32 0.14285715, %v1404_v41  ;;  %vm1468_vm4 = vcmp.eq.f32.partialorder %v1416_v39, inf }
 0x52e   : > { %v1455_v47 = vsel %vm1454_vm15, %v1414_v21, %v1453_v26  ;;  %v1471_v62 = vand.u32 2147483648, %v1416_v39  ;;  %vm1470_vm5 = vcmp.eq.f32.partialorder %v1416_v39, 0.0 }
 0x52f   : > { %v1887_v49 = vpop.eup %1886  ;;  %v1507_v25 = vmul.f32 %v2607_v13, %v1492_v43  ;;  %v1458_v3 = vsel %vm1456_vm1, %v1457_v6, %v1455_v47  ;;  %1892 = vrsqrt.f32 %v1415_v48  ;;  %vm1461_vm6 = vcmp.eq.f32.partialorder %v1415_v48, inf }
 0x530   : > { %v1889_v50 = vpop.eup %1888  ;;  %v1491_v51 = vmul.f32 %v1887_v49, %v2578_v1  ;;  %v1478_v52 = vadd.f32 0.001, %v1458_v3  ;;  %v1464_v38 = vand.u32 2147483648, %v1415_v48  ;;  %vm1463_vm7 = vcmp.eq.f32.partialorder %v1415_v48, 0.0 }
 0x531   : > { %v1522_v44 = vadd.f32 %v2613_v17, %v1507_v25  ;;  %v1446_v15 = vmul.f32 %v1889_v50, %v1413_v35 }
 0x532   : > { %v1506_v32 = vmul.f32 %v2607_v13, %v1491_v51  ;;  %1894 = vrcp.f32 %v1478_v52 }
 0x533   : > { %1530 = vst.msk [vmem:[%s2621_s23 + $0x18] sm:$0xff] %vm297_vm0, %v1522_v44  ;;  %v1448_v54 = vsel %vm1447_vm2, %v1413_v35, %v1446_v15 }
 0x534   : > { %v1521_v56 = vadd.f32 %v2613_v17, %v1506_v32  ;;  %v1451_v57 = vsel %vm1449_vm3, %v1450_v53, %v1448_v54 }
 0x535   : > { %v1477_v59 = vadd.f32 0.001, %v1451_v57 }
 0x536   : > { %1529 = vst.msk [vmem:[%s2621_s23 + $0x10] sm:$0xff] %vm297_vm0, %v1521_v56 }
 0x537   : > { %1896 = vrcp.f32 %v1477_v59 }
 0x53a   : > { %v1891_v1 = vpop.eup %1890 }
 0x53b   : > { %v1467_v60 = vmul.f32 %v1891_v1, %v1416_v39 }
 0x53c   : > { %v1893_v63 = vpop.eup %1892 }
 0x53d   : > { %v1469_v0 = vsel %vm1468_vm4, %v1416_v39, %v1467_v60  ;;  %v1460_v11 = vmul.f32 %v1893_v63, %v1415_v48 }
 0x53e   : > { %v1472_v5 = vsel %vm1470_vm5, %v1471_v62, %v1469_v0 }
 0x53f   : > { %v1895_v8 = vpop.eup %1894  ;;  %v1480_v12 = vadd.f32 0.001, %v1472_v5  ;;  %v1462_v14 = vsel %vm1461_vm6, %v1415_v48, %v1460_v11 }
 0x540   : > { %v1494_v7 = vmul.f32 %v1895_v8, %v2584_v42  ;;  %v1465_v16 = vsel %vm1463_vm7, %v1464_v38, %v1462_v14 }
 0x541   : > { %1898 = vrcp.f32 %v1480_v12  ;;  %v1479_v58 = vadd.f32 0.001, %v1465_v16 }
 0x542   : > { %v1509_v18 = vmul.f32 %v2607_v13, %v1494_v7 }
 0x543   : > { %1900 = vrcp.f32 %v1479_v58 }
 0x544   : > { %v1897_v22 = vpop.eup %1896  ;;  %v1524_v9 = vadd.f32 %v2613_v17, %v1509_v18 }
 0x545   : > { %v1493_v2 = vmul.f32 %v1897_v22, %v2586_v61 }
 0x546   : > { %1532 = vst.msk [vmem:[%s2621_s23 + $0x28] sm:$0xff] %vm297_vm0, %v1524_v9 }
 0x547   : > { %v1508_v42 = vmul.f32 %v2607_v13, %v1493_v2 }
 0x549   : > { %v1523_v24 = vadd.f32 %v2613_v17, %v1508_v42 }
 0x54b   : > { %1531 = vst.msk [vmem:[%s2621_s23 + $0x20] sm:$0xff] %vm297_vm0, %v1523_v24 }
 0x54e   : > { %v1899_v27 = vpop.eup %1898 }
 0x54f   : > { %v1496_v19 = vmul.f32 %v1899_v27, %v2594_v46 }
 0x550   : > { %v1901_v33 = vpop.eup %1900 }
 0x551   : > { %v1511_v20 = vmul.f32 %v2607_v13, %v1496_v19  ;;  %v1495_v28 = vmul.f32 %v1901_v33, %v2596_v4 }
 0x553   : > { %v1526_v61 = vadd.f32 %v2613_v17, %v1511_v20  ;;  %v1510_v21 = vmul.f32 %v2607_v13, %v1495_v28 }
 0x555   : > { %1534 = vst.msk [vmem:[%s2621_s23 + $0x38] sm:$0xff] %vm297_vm0, %v1526_v61  ;;  %v1525_v46 = vadd.f32 %v2613_v17, %v1510_v21 }
 0x557   : > { %1533 = vst.msk [vmem:[%s2621_s23 + $0x30] sm:$0xff] %vm297_vm0, %v1525_v46 }
 0x558   : > { %1943 = shalt.err (!%p1940_p10)
}
 0x559   : > { %s1944_s15 = scalar_lea.hbm %s2660_s18, 1024  ;;  %s1948_s11 = scalar_lea.hbm %s2716_s7, 2048 }
 0x55a   : > { %p1945_p0 = scmp.ne.s32.totalorder %s2660_s18, %s1944_s15  ;;  %p1949_p1 = scmp.lt.s32.totalorder %s2660_s18, %s2716_s7 }
 0x55b   : > { %p1950_p3 = scmp.lt.s32.totalorder %s1948_s11, %s1944_s15 }
 0x55c   : > { %p1946_p2 = pnand %p1945_p0, %p2725_p12 }
 0x55d   : > { %p1951_p6 = por %p1950_p3, %p1949_p1 }
 0x55e   : > { %p1947_p9 = pneg %p1946_p2 }
 0x560   : > { %p1952_p11 = pnand %p1951_p6, %p1947_p9 }
 0x562   : > { %1955 = shalt.err (!%p1952_p11)
}
 0x563   : > { %s2007_s12 = smov 128  }
 0x564   : > { %1752 = dma.vmem_to_hbm [thread:$0]  (%p2725_p12), %s2663_s19, 1024, %s2660_s18, %s1536_s28, %s2007_s12, %s2007_s12, %s2001_s20  }
 0x565 PF: > { %s1564_s21 = sand.u32 1, %s1982_s24   ;;  %p2726_p13 = scmp.ne.s32.totalorder %s2722_s14, 0 }
 0x566   : > { %p2727_p4 = scmp.ge.s32.totalorder %s1994_s27, 2  ;;  %s1565_s16 = scalar_lea.sflag [#allocation5], %s1564_s21 }
 0x568   : > { %p1759_p5 = pnand %p2727_p4, %p2726_p13 }
 0x56a   : > { %p1760_p7 = pneg %p1759_p5 }
 0x56c   : > { %1977 = dma.done.wait (%p1760_p7), %s1565_s16, 1024  }
 0x56d   : > { %1979 = vsyncadd (%p1760_p7), %s1565_s16, 4294966272  ;;  %p20_p8 = scmp.ge.s32.totalorder %s2073_s30, 4   ;;  %s2728_s24 = smov %s1986_s25 }
 0x56e   : > { %s2729_s25 = smov %s1990_s26  ;;  %s2730_s26 = smov %s2085_s10 }
 0x56f   : > { %s2731_s27 = smov %s2073_s30  ;;  %22 = sbr.rel (!%p20_p8) target bundleno = 5 (0x5), region = 94 }
 0x574   :  { %1570 = vsyncpa [#allocation4], 1 }
 0x575   :  { %1572 = vsyncpa [#allocation4 + $0x1], 1 }
 0x576   :  { %1573 = vsyncpa [#allocation5], 1 }
 0x577   :  { %1575 = vsyncpa [#allocation5 + $0x1], 1 }

</bundles_post_ra>
